<compile_context>
chip_gen: v7x
topology: tpu7x:2x2x1
jax: 0.10.0
libtpu: 0.0.40
codegen_flags: <defaults>
</compile_context>

<pallas_src>
import functools

import jax
import jax.numpy as jnp
import numpy as np
from jax.experimental import pallas as pl
from jax.experimental.pallas import tpu as pltpu

LANE = 128  # lane-padded readout width


# ----------------------------- Pallas kernel -------------------------------
def _gin_dc_kernel(nlayer, nclass,
                   x_ref, s_ref, agin_ref, agcn_ref, p_ref,
                   wpre_ref, wes_ref, w1_ref, w2_ref, wg_ref, blyr_ref,
                   whp_ref, wpost_ref, wro_ref, bmain_ref, bro_ref,
                   out_ref):
    f32 = jnp.float32
    bf16 = jnp.bfloat16
    nhid = wpost_ref.shape[0]

    A_gin = agin_ref[...]          # [N, N] bf16 (0/1 entries -> exact)
    A_gcn = agcn_ref[...]          # [N, N] f32 (normalized, keep full precision)

    # ---- pre / embedding_s -------------------------------------------------
    x = jnp.dot(x_ref[...], wpre_ref[...], preferred_element_type=f32) \
        + bmain_ref[0:1, :]
    s = jnp.dot(s_ref[...], wes_ref[...], preferred_element_type=f32) \
        + bmain_ref[1:2, :]

    # Fused activation buffer: lanes [0, h) hold x, lanes [h, 2h) hold s.
    xs = jnp.concatenate([x, s], axis=1)                      # [N, 2h] f32

    for l in range(nlayer):
        W1 = w1_ref[l]                                        # (2h, h)
        W2 = w2_ref[l]                                        # (h, h)
        Wg = wg_ref[l]                                        # (h, h)
        bl = blyr_ref[l]                                      # (3, h)
        b1, b2, bg = bl[0:1, :], bl[1:2, :], bl[2:3, :]

        # GINConv (eps=0) on the fused buffer: ONE wide A@xs matmul,
        # bf16 operands, f32 accumulation.
        agg = xs + jnp.dot(A_gin, xs.astype(bf16), preferred_element_type=f32)
        # nn(cat(x, s)) = Lin(2h,h) -> ReLU -> Lin(h,h); then module-level ReLU.
        h1 = jnp.maximum(jnp.dot(agg, W1, preferred_element_type=f32) + b1, 0.0)
        x = jnp.maximum(jnp.dot(h1, W2, preferred_element_type=f32) + b2, 0.0)
        # dropout: eval mode -> identity

        # GCNConv on the (old) s half, all f32, then tanh.
        s_old = xs[:, nhid:]
        s = jnp.tanh(
            jnp.dot(A_gcn, jnp.dot(s_old, Wg, preferred_element_type=f32),
                    preferred_element_type=f32) + bg)

        xs = jnp.concatenate([x, s], axis=1)

    # Whp(cat(x, s)) -- single [2h, h] matmul on the fused buffer.
    xf = jnp.dot(xs, whp_ref[...], preferred_element_type=f32) + bmain_ref[2:3, :]

    # global_add_pool
    g = jnp.dot(p_ref[...], xf, preferred_element_type=f32)

    # post: Linear + ReLU ; dropout identity
    g = jnp.maximum(
        jnp.dot(g, wpost_ref[...], preferred_element_type=f32) + bmain_ref[3:4, :],
        0.0)

    # readout (lane-padded to 128 cols) + log_softmax over the first nclass lanes
    logits = jnp.dot(g, wro_ref[...], preferred_element_type=f32) + bro_ref[...]
    col = jax.lax.broadcasted_iota(jnp.int32, logits.shape, 1)
    valid = col < nclass
    neg = jnp.float32(-1e30)
    lm = jnp.where(valid, logits, neg)
    m = jnp.max(lm, axis=1, keepdims=True)
    ex = jnp.where(valid, jnp.exp(lm - m), 0.0)
    lse = m + jnp.log(jnp.sum(ex, axis=1, keepdims=True))
    out_ref[...] = jnp.where(valid, logits - lse, 0.0)


# ------------------------------- wrapper ------------------------------------
def gin_dc_forward(x, s, A_gin, A_gcn, P, params, nclass, nlayer):
    B, N = P.shape
    nhid = params["Wpost"].shape[0]
    h2 = 2 * nhid
    assert nclass <= LANE

    # Lane-dense readout: pad weight/bias to 128 output columns (zeros beyond
    # nclass; masked out inside the kernel so the padding never affects results).
    Wro_p = jnp.zeros((nhid, LANE), jnp.float32).at[:, :nclass].set(params["Wro"])
    bro_p = jnp.zeros((1, LANE), jnp.float32).at[:, :nclass].set(params["bro"])

    inputs = [
        x.astype(jnp.float32),
        s.astype(jnp.float32),
        A_gin.astype(jnp.bfloat16),    # 0/1 adjacency: exact in bf16, half the bytes
        A_gcn.astype(jnp.float32),     # normalized adjacency: keep f32 (precision)
        P.astype(jnp.float32),
        params["Wpre"], params["Wes"],
        params["W1"], params["W2"], params["Wg"], params["b_layers"],
        params["Whp"], params["Wpost"], Wro_p, params["b_main"], bro_p,
    ]

    in_bytes = sum(int(a.size) * a.dtype.itemsize for a in inputs)
    out_bytes = B * LANE * 4
    nfeat, n_se = x.shape[1], s.shape[1]
    flops = 2 * (
        N * nfeat * nhid + N * n_se * nhid
        + nlayer * (N * N * h2 + N * h2 * nhid + 2 * N * nhid * nhid + N * N * nhid)
        + N * h2 * nhid + B * N * nhid + B * nhid * nhid + B * nhid * LANE)
    transcendentals = nlayer * N * nhid + 2 * B * LANE  # tanh + exp/log

    # VMEM budget: everything (incl. both dense [N,N] adjacencies) is resident.
    # TODO(synk): for large N where the adjacencies exceed ~half of VMEM (64 MiB
    # physical on v7x, 128 MiB on v5e/v6e), switch to per-layer pallas_calls
    # row-tiled over nodes (grid=(N//tm,), A block (tm, N),
    # dimension_semantics=("parallel",)) so A streams from HBM under BlockSpec
    # pipelining instead of living fully in VMEM.
    vmem_limit = 32 * 1024 * 1024

    out = pl.pallas_call(
        functools.partial(_gin_dc_kernel, nlayer, nclass),
        out_shape=jax.ShapeDtypeStruct((B, LANE), jnp.float32),
        compiler_params=pltpu.CompilerParams(vmem_limit_bytes=vmem_limit),
        cost_estimate=pl.CostEstimate(
            flops=int(flops),
            transcendentals=int(transcendentals),
            bytes_accessed=int(in_bytes + out_bytes)),
    )(*inputs)
    return out[:, :nclass]


# --------------------------- parameter / graph setup ------------------------
def init_params(key, nfeat, n_se, nhid, nclass, nlayer):
    n_linears = 5 + 3 * nlayer
    keys = iter(jax.random.split(key, 2 * n_linears))

    def linear(fan_in, fan_out):
        bound = 1.0 / np.sqrt(fan_in)
        W = jax.random.uniform(next(keys), (fan_in, fan_out), jnp.float32,
                               -bound, bound)
        b = jax.random.uniform(next(keys), (1, fan_out), jnp.float32,
                               -bound, bound)
        return W, b

    Wpre, bpre = linear(nfeat, nhid)
    Wes, bes = linear(n_se, nhid)
    W1s, W2s, Wgs, bls = [], [], [], []
    for _ in range(nlayer):
        W1, b1 = linear(2 * nhid, nhid)     # nn first Linear: kept whole (fused)
        W2, b2 = linear(nhid, nhid)
        Wg, bg = linear(nhid, nhid)
        W1s.append(W1); W2s.append(W2); Wgs.append(Wg)
        bls.append(jnp.concatenate([b1, b2, bg], axis=0))    # (3, nhid)
    Whp, bhp = linear(2 * nhid, nhid)
    Wpost, bpost = linear(nhid, nhid)
    Wro, bro = linear(nhid, nclass)
    return {
        "Wpre": Wpre, "Wes": Wes,
        "W1": jnp.stack(W1s),              # (nlayer, 2h, h)
        "W2": jnp.stack(W2s),              # (nlayer, h, h)
        "Wg": jnp.stack(Wgs),              # (nlayer, h, h)
        "b_layers": jnp.stack(bls),        # (nlayer, 3, h) : b1, b2, bg
        "Whp": Whp, "Wpost": Wpost, "Wro": Wro, "bro": bro,
        "b_main": jnp.concatenate([bpre, bes, bhp, bpost], axis=0),  # (4, h)
    }


def build_graph(num_graphs, nodes_per_graph):
    N = num_graphs * nodes_per_graph
    A = np.zeros((N, N), dtype=np.float32)
    batch = np.zeros((N,), dtype=np.int32)
    for g in range(num_graphs):
        base = g * nodes_per_graph
        for k in range(nodes_per_graph):
            i = base + k
            j = base + (k + 1) % nodes_per_graph
            A[i, j] = 1.0   # undirected ring
            A[j, i] = 1.0
            batch[i] = g
    A_gin = A.copy()                                    # sum over in-neighbors
    A_sl = A + np.eye(N, dtype=np.float32)              # GCN: self loops + norm
    dinv = 1.0 / np.sqrt(A_sl.sum(axis=1))
    A_gcn = (dinv[:, None] * A_sl) * dinv[None, :]
    P = np.zeros((num_graphs, N), dtype=np.float32)
    P[batch, np.arange(N)] = 1.0
    return jnp.asarray(A_gin), jnp.asarray(A_gcn), jnp.asarray(P)


# ------------------------------ JAX reference (pure f32) --------------------
def reference_forward(x, s, A_gin, A_gcn, P, params, nlayer):
    p = params
    x = x @ p["Wpre"] + p["b_main"][0:1]
    s = s @ p["Wes"] + p["b_main"][1:2]
    for l in range(nlayer):
        xs = jnp.concatenate([x, s], axis=1)
        agg = xs + A_gin @ xs                              # GINConv eps=0
        h = jax.nn.relu(agg @ p["W1"][l] + p["b_layers"][l, 0:1])
        x = jax.nn.relu(h @ p["W2"][l] + p["b_layers"][l, 1:2])
        s = jnp.tanh(A_gcn @ (s @ p["Wg"][l]) + p["b_layers"][l, 2:3])
    x = jnp.concatenate([x, s], axis=1) @ p["Whp"] + p["b_main"][2:3]
    g = P @ x
    g = jax.nn.relu(g @ p["Wpost"] + p["b_main"][3:4])
    logits = g @ p["Wro"] + p["bro"]
    return jax.nn.log_softmax(logits, axis=1)


# ----------------------------------- main ------------------------------------
if __name__ == "__main__":
    # nhid raised to 128 (perf feedback: lane-dense features / MXU columns).
    nfeat, n_se, nhid, nclass, nlayer = 16, 8, 128, 4, 2
    num_graphs, nodes_per_graph = 2, 8
    N = num_graphs * nodes_per_graph

    key = jax.random.PRNGKey(0)
    kx, ks, kp = jax.random.split(key, 3)
    x = jax.random.normal(kx, (N, nfeat), jnp.float32)
    s = jax.random.normal(ks, (N, n_se), jnp.float32)
    params = init_params(kp, nfeat, n_se, nhid, nclass, nlayer)

    A_gin, A_gcn, P = build_graph(num_graphs, nodes_per_graph)

    out = gin_dc_forward(x, s, A_gin, A_gcn, P, params, nclass, nlayer)
    out = jax.block_until_ready(out)

    ref = reference_forward(x, s, A_gin, A_gcn, P, params, nlayer)
    # The only deviation from the pure-f32 reference is the bf16 MXU path for
    # the 0/1 GIN-adjacency aggregation (f32 accumulation), so agreement is at
    # the ~1e-3 level; tolerance set accordingly.
    np.testing.assert_allclose(np.asarray(out), np.asarray(ref),
                               rtol=2e-2, atol=2e-2)

    print("KERNEL_OK")
</pallas_src>

<mosaic_0001>
module attributes {stable_mosaic.version = 11 : i64} {
  func.func @_gin_dc_kernel(%arg0: memref<16x16xf32, #tpu.memory_space<vmem>>, %arg1: memref<16x8xf32, #tpu.memory_space<vmem>>, %arg2: memref<16x16xbf16, #tpu.memory_space<vmem>>, %arg3: memref<16x16xf32, #tpu.memory_space<vmem>>, %arg4: memref<2x16xf32, #tpu.memory_space<vmem>>, %arg5: memref<16x128xf32, #tpu.memory_space<vmem>>, %arg6: memref<8x128xf32, #tpu.memory_space<vmem>>, %arg7: memref<2x256x128xf32, #tpu.memory_space<vmem>>, %arg8: memref<2x128x128xf32, #tpu.memory_space<vmem>>, %arg9: memref<2x128x128xf32, #tpu.memory_space<vmem>>, %arg10: memref<2x3x128xf32, #tpu.memory_space<vmem>>, %arg11: memref<256x128xf32, #tpu.memory_space<vmem>>, %arg12: memref<128x128xf32, #tpu.memory_space<vmem>>, %arg13: memref<128x128xf32, #tpu.memory_space<vmem>>, %arg14: memref<4x128xf32, #tpu.memory_space<vmem>>, %arg15: memref<1x128xf32, #tpu.memory_space<vmem>>, %arg16: memref<2x128xf32, #tpu.memory_space<vmem>>) attributes {dimension_semantics = [], scalar_prefetch = 0 : i64, scratch_operands = 0 : i64, tpu.core_type = #tpu.core_type<tc>} {
    %c0 = arith.constant 0 : index
    %c0_0 = arith.constant 0 : index
    %0 = vector.load %arg2[%c0, %c0_0] : memref<16x16xbf16, #tpu.memory_space<vmem>>, vector<16x16xbf16>
    %c0_1 = arith.constant 0 : index
    %c0_2 = arith.constant 0 : index
    %1 = vector.load %arg3[%c0_1, %c0_2] : memref<16x16xf32, #tpu.memory_space<vmem>>, vector<16x16xf32>
    %c0_3 = arith.constant 0 : index
    %c0_4 = arith.constant 0 : index
    %2 = vector.load %arg0[%c0_3, %c0_4] : memref<16x16xf32, #tpu.memory_space<vmem>>, vector<16x16xf32>
    %c0_5 = arith.constant 0 : index
    %c0_6 = arith.constant 0 : index
    %3 = vector.load %arg5[%c0_5, %c0_6] : memref<16x128xf32, #tpu.memory_space<vmem>>, vector<16x128xf32>
    %cst = arith.constant dense<0.000000e+00> : vector<16x128xf32>
    %4 = tpu.matmul %2, %3, %cst {dimension_numbers = #tpu.dot_dimension_numbers<[1], [0], [0], [1], [0, 0, 1, 1], [], []>} : vector<16x16xf32>, vector<16x128xf32>, vector<16x128xf32> -> vector<16x128xf32>
    %c0_7 = arith.constant 0 : index
    %c0_8 = arith.constant 0 : index
    %5 = vector.load %arg14[%c0_7, %c0_8] : memref<4x128xf32, #tpu.memory_space<vmem>>, vector<1x128xf32>
    %6 = vector.broadcast %5 : vector<1x128xf32> to vector<16x128xf32>
    %7 = arith.addf %4, %6 : vector<16x128xf32>
    %c0_9 = arith.constant 0 : index
    %c0_10 = arith.constant 0 : index
    %8 = vector.load %arg1[%c0_9, %c0_10] : memref<16x8xf32, #tpu.memory_space<vmem>>, vector<16x8xf32>
    %c0_11 = arith.constant 0 : index
    %c0_12 = arith.constant 0 : index
    %9 = vector.load %arg6[%c0_11, %c0_12] : memref<8x128xf32, #tpu.memory_space<vmem>>, vector<8x128xf32>
    %cst_13 = arith.constant dense<0.000000e+00> : vector<16x128xf32>
    %10 = tpu.matmul %8, %9, %cst_13 {dimension_numbers = #tpu.dot_dimension_numbers<[1], [0], [0], [1], [0, 0, 1, 1], [], []>} : vector<16x8xf32>, vector<8x128xf32>, vector<16x128xf32> -> vector<16x128xf32>
    %c1 = arith.constant 1 : index
    %c0_14 = arith.constant 0 : index
    %11 = vector.load %arg14[%c1, %c0_14] : memref<4x128xf32, #tpu.memory_space<vmem>>, vector<1x128xf32>
    %12 = vector.broadcast %11 : vector<1x128xf32> to vector<16x128xf32>
    %13 = arith.addf %10, %12 : vector<16x128xf32>
    %14 = tpu.concatenate %7, %13 in 1 : vector<16x128xf32>, vector<16x128xf32> -> vector<16x256xf32>
    %c0_15 = arith.constant 0 : index
    %c0_16 = arith.constant 0 : index
    %c0_17 = arith.constant 0 : index
    %15 = vector.load %arg7[%c0_15, %c0_16, %c0_17] : memref<2x256x128xf32, #tpu.memory_space<vmem>>, vector<1x256x128xf32>
    %16 = vector.shape_cast %15 : vector<1x256x128xf32> to vector<256x128xf32>
    %c0_18 = arith.constant 0 : index
    %c0_19 = arith.constant 0 : index
    %c0_20 = arith.constant 0 : index
    %17 = vector.load %arg8[%c0_18, %c0_19, %c0_20] : memref<2x128x128xf32, #tpu.memory_space<vmem>>, vector<1x128x128xf32>
    %18 = vector.shape_cast %17 : vector<1x128x128xf32> to vector<128x128xf32>
    %c0_21 = arith.constant 0 : index
    %c0_22 = arith.constant 0 : index
    %c0_23 = arith.constant 0 : index
    %19 = vector.load %arg9[%c0_21, %c0_22, %c0_23] : memref<2x128x128xf32, #tpu.memory_space<vmem>>, vector<1x128x128xf32>
    %20 = vector.shape_cast %19 : vector<1x128x128xf32> to vector<128x128xf32>
    %c0_24 = arith.constant 0 : index
    %c0_25 = arith.constant 0 : index
    %c0_26 = arith.constant 0 : index
    %21 = vector.load %arg10[%c0_24, %c0_25, %c0_26] : memref<2x3x128xf32, #tpu.memory_space<vmem>>, vector<1x3x128xf32>
    %22 = vector.shape_cast %21 : vector<1x3x128xf32> to vector<3x128xf32>
    %23 = vector.extract_strided_slice %22 {offsets = [0, 0], sizes = [1, 128], strides = [1, 1]} : vector<3x128xf32> to vector<1x128xf32>
    %24 = vector.extract_strided_slice %22 {offsets = [1, 0], sizes = [1, 128], strides = [1, 1]} : vector<3x128xf32> to vector<1x128xf32>
    %25 = vector.extract_strided_slice %22 {offsets = [2, 0], sizes = [1, 128], strides = [1, 1]} : vector<3x128xf32> to vector<1x128xf32>
    %26 = arith.truncf %14 : vector<16x256xf32> to vector<16x256xbf16>
    %cst_27 = arith.constant dense<0.000000e+00> : vector<16x256xf32>
    %27 = tpu.matmul %0, %26, %cst_27 {dimension_numbers = #tpu.dot_dimension_numbers<[1], [0], [0], [1], [0, 0, 1, 1], [], []>} : vector<16x16xbf16>, vector<16x256xbf16>, vector<16x256xf32> -> vector<16x256xf32>
    %28 = arith.addf %14, %27 : vector<16x256xf32>
    %cst_28 = arith.constant dense<0.000000e+00> : vector<16x128xf32>
    %29 = tpu.matmul %28, %16, %cst_28 {dimension_numbers = #tpu.dot_dimension_numbers<[1], [0], [0], [1], [0, 0, 1, 1], [], []>} : vector<16x256xf32>, vector<256x128xf32>, vector<16x128xf32> -> vector<16x128xf32>
    %30 = vector.broadcast %23 : vector<1x128xf32> to vector<16x128xf32>
    %31 = arith.addf %29, %30 : vector<16x128xf32>
    %cst_29 = arith.constant 0.000000e+00 : f32
    %32 = vector.broadcast %cst_29 : f32 to vector<16x128xf32>
    %33 = arith.maximumf %31, %32 : vector<16x128xf32>
    %cst_30 = arith.constant dense<0.000000e+00> : vector<16x128xf32>
    %34 = tpu.matmul %33, %18, %cst_30 {dimension_numbers = #tpu.dot_dimension_numbers<[1], [0], [0], [1], [0, 0, 1, 1], [], []>} : vector<16x128xf32>, vector<128x128xf32>, vector<16x128xf32> -> vector<16x128xf32>
    %35 = vector.broadcast %24 : vector<1x128xf32> to vector<16x128xf32>
    %36 = arith.addf %34, %35 : vector<16x128xf32>
    %cst_31 = arith.constant 0.000000e+00 : f32
    %37 = vector.broadcast %cst_31 : f32 to vector<16x128xf32>
    %38 = arith.maximumf %36, %37 : vector<16x128xf32>
    %39 = vector.extract_strided_slice %14 {offsets = [0, 128], sizes = [16, 128], strides = [1, 1]} : vector<16x256xf32> to vector<16x128xf32>
    %cst_32 = arith.constant dense<0.000000e+00> : vector<16x128xf32>
    %40 = tpu.matmul %39, %20, %cst_32 {dimension_numbers = #tpu.dot_dimension_numbers<[1], [0], [0], [1], [0, 0, 1, 1], [], []>} : vector<16x128xf32>, vector<128x128xf32>, vector<16x128xf32> -> vector<16x128xf32>
    %cst_33 = arith.constant dense<0.000000e+00> : vector<16x128xf32>
    %41 = tpu.matmul %1, %40, %cst_33 {dimension_numbers = #tpu.dot_dimension_numbers<[1], [0], [0], [1], [0, 0, 1, 1], [], []>} : vector<16x16xf32>, vector<16x128xf32>, vector<16x128xf32> -> vector<16x128xf32>
    %42 = vector.broadcast %25 : vector<1x128xf32> to vector<16x128xf32>
    %43 = arith.addf %41, %42 : vector<16x128xf32>
    %44 = math.tanh %43 : vector<16x128xf32>
    %45 = tpu.concatenate %38, %44 in 1 : vector<16x128xf32>, vector<16x128xf32> -> vector<16x256xf32>
    %c1_34 = arith.constant 1 : index
    %c0_35 = arith.constant 0 : index
    %c0_36 = arith.constant 0 : index
    %46 = vector.load %arg7[%c1_34, %c0_35, %c0_36] : memref<2x256x128xf32, #tpu.memory_space<vmem>>, vector<1x256x128xf32>
    %47 = vector.shape_cast %46 : vector<1x256x128xf32> to vector<256x128xf32>
    %c1_37 = arith.constant 1 : index
    %c0_38 = arith.constant 0 : index
    %c0_39 = arith.constant 0 : index
    %48 = vector.load %arg8[%c1_37, %c0_38, %c0_39] : memref<2x128x128xf32, #tpu.memory_space<vmem>>, vector<1x128x128xf32>
    %49 = vector.shape_cast %48 : vector<1x128x128xf32> to vector<128x128xf32>
    %c1_40 = arith.constant 1 : index
    %c0_41 = arith.constant 0 : index
    %c0_42 = arith.constant 0 : index
    %50 = vector.load %arg9[%c1_40, %c0_41, %c0_42] : memref<2x128x128xf32, #tpu.memory_space<vmem>>, vector<1x128x128xf32>
    %51 = vector.shape_cast %50 : vector<1x128x128xf32> to vector<128x128xf32>
    %c1_43 = arith.constant 1 : index
    %c0_44 = arith.constant 0 : index
    %c0_45 = arith.constant 0 : index
    %52 = vector.load %arg10[%c1_43, %c0_44, %c0_45] : memref<2x3x128xf32, #tpu.memory_space<vmem>>, vector<1x3x128xf32>
    %53 = vector.shape_cast %52 : vector<1x3x128xf32> to vector<3x128xf32>
    %54 = vector.extract_strided_slice %53 {offsets = [0, 0], sizes = [1, 128], strides = [1, 1]} : vector<3x128xf32> to vector<1x128xf32>
    %55 = vector.extract_strided_slice %53 {offsets = [1, 0], sizes = [1, 128], strides = [1, 1]} : vector<3x128xf32> to vector<1x128xf32>
    %56 = vector.extract_strided_slice %53 {offsets = [2, 0], sizes = [1, 128], strides = [1, 1]} : vector<3x128xf32> to vector<1x128xf32>
    %57 = arith.truncf %45 : vector<16x256xf32> to vector<16x256xbf16>
    %cst_46 = arith.constant dense<0.000000e+00> : vector<16x256xf32>
    %58 = tpu.matmul %0, %57, %cst_46 {dimension_numbers = #tpu.dot_dimension_numbers<[1], [0], [0], [1], [0, 0, 1, 1], [], []>} : vector<16x16xbf16>, vector<16x256xbf16>, vector<16x256xf32> -> vector<16x256xf32>
    %59 = arith.addf %45, %58 : vector<16x256xf32>
    %cst_47 = arith.constant dense<0.000000e+00> : vector<16x128xf32>
    %60 = tpu.matmul %59, %47, %cst_47 {dimension_numbers = #tpu.dot_dimension_numbers<[1], [0], [0], [1], [0, 0, 1, 1], [], []>} : vector<16x256xf32>, vector<256x128xf32>, vector<16x128xf32> -> vector<16x128xf32>
    %61 = vector.broadcast %54 : vector<1x128xf32> to vector<16x128xf32>
    %62 = arith.addf %60, %61 : vector<16x128xf32>
    %cst_48 = arith.constant 0.000000e+00 : f32
    %63 = vector.broadcast %cst_48 : f32 to vector<16x128xf32>
    %64 = arith.maximumf %62, %63 : vector<16x128xf32>
    %cst_49 = arith.constant dense<0.000000e+00> : vector<16x128xf32>
    %65 = tpu.matmul %64, %49, %cst_49 {dimension_numbers = #tpu.dot_dimension_numbers<[1], [0], [0], [1], [0, 0, 1, 1], [], []>} : vector<16x128xf32>, vector<128x128xf32>, vector<16x128xf32> -> vector<16x128xf32>
    %66 = vector.broadcast %55 : vector<1x128xf32> to vector<16x128xf32>
    %67 = arith.addf %65, %66 : vector<16x128xf32>
    %cst_50 = arith.constant 0.000000e+00 : f32
    %68 = vector.broadcast %cst_50 : f32 to vector<16x128xf32>
    %69 = arith.maximumf %67, %68 : vector<16x128xf32>
    %70 = vector.extract_strided_slice %45 {offsets = [0, 128], sizes = [16, 128], strides = [1, 1]} : vector<16x256xf32> to vector<16x128xf32>
    %cst_51 = arith.constant dense<0.000000e+00> : vector<16x128xf32>
    %71 = tpu.matmul %70, %51, %cst_51 {dimension_numbers = #tpu.dot_dimension_numbers<[1], [0], [0], [1], [0, 0, 1, 1], [], []>} : vector<16x128xf32>, vector<128x128xf32>, vector<16x128xf32> -> vector<16x128xf32>
    %cst_52 = arith.constant dense<0.000000e+00> : vector<16x128xf32>
    %72 = tpu.matmul %1, %71, %cst_52 {dimension_numbers = #tpu.dot_dimension_numbers<[1], [0], [0], [1], [0, 0, 1, 1], [], []>} : vector<16x16xf32>, vector<16x128xf32>, vector<16x128xf32> -> vector<16x128xf32>
    %73 = vector.broadcast %56 : vector<1x128xf32> to vector<16x128xf32>
    %74 = arith.addf %72, %73 : vector<16x128xf32>
    %75 = math.tanh %74 : vector<16x128xf32>
    %76 = tpu.concatenate %69, %75 in 1 : vector<16x128xf32>, vector<16x128xf32> -> vector<16x256xf32>
    %c0_53 = arith.constant 0 : index
    %c0_54 = arith.constant 0 : index
    %77 = vector.load %arg11[%c0_53, %c0_54] : memref<256x128xf32, #tpu.memory_space<vmem>>, vector<256x128xf32>
    %cst_55 = arith.constant dense<0.000000e+00> : vector<16x128xf32>
    %78 = tpu.matmul %76, %77, %cst_55 {dimension_numbers = #tpu.dot_dimension_numbers<[1], [0], [0], [1], [0, 0, 1, 1], [], []>} : vector<16x256xf32>, vector<256x128xf32>, vector<16x128xf32> -> vector<16x128xf32>
    %c2 = arith.constant 2 : index
    %c0_56 = arith.constant 0 : index
    %79 = vector.load %arg14[%c2, %c0_56] : memref<4x128xf32, #tpu.memory_space<vmem>>, vector<1x128xf32>
    %80 = vector.broadcast %79 : vector<1x128xf32> to vector<16x128xf32>
    %81 = arith.addf %78, %80 : vector<16x128xf32>
    %c0_57 = arith.constant 0 : index
    %c0_58 = arith.constant 0 : index
    %82 = vector.load %arg4[%c0_57, %c0_58] : memref<2x16xf32, #tpu.memory_space<vmem>>, vector<2x16xf32>
    %cst_59 = arith.constant dense<0.000000e+00> : vector<2x128xf32>
    %83 = tpu.matmul %82, %81, %cst_59 {dimension_numbers = #tpu.dot_dimension_numbers<[1], [0], [0], [1], [0, 0, 1, 1], [], []>} : vector<2x16xf32>, vector<16x128xf32>, vector<2x128xf32> -> vector<2x128xf32>
    %c0_60 = arith.constant 0 : index
    %c0_61 = arith.constant 0 : index
    %84 = vector.load %arg12[%c0_60, %c0_61] : memref<128x128xf32, #tpu.memory_space<vmem>>, vector<128x128xf32>
    %cst_62 = arith.constant dense<0.000000e+00> : vector<2x128xf32>
    %85 = tpu.matmul %83, %84, %cst_62 {dimension_numbers = #tpu.dot_dimension_numbers<[1], [0], [0], [1], [0, 0, 1, 1], [], []>} : vector<2x128xf32>, vector<128x128xf32>, vector<2x128xf32> -> vector<2x128xf32>
    %c3 = arith.constant 3 : index
    %c0_63 = arith.constant 0 : index
    %86 = vector.load %arg14[%c3, %c0_63] : memref<4x128xf32, #tpu.memory_space<vmem>>, vector<1x128xf32>
    %87 = vector.broadcast %86 : vector<1x128xf32> to vector<2x128xf32>
    %88 = arith.addf %85, %87 : vector<2x128xf32>
    %cst_64 = arith.constant 0.000000e+00 : f32
    %89 = vector.broadcast %cst_64 : f32 to vector<2x128xf32>
    %90 = arith.maximumf %88, %89 : vector<2x128xf32>
    %c0_65 = arith.constant 0 : index
    %c0_66 = arith.constant 0 : index
    %91 = vector.load %arg13[%c0_65, %c0_66] : memref<128x128xf32, #tpu.memory_space<vmem>>, vector<128x128xf32>
    %cst_67 = arith.constant dense<0.000000e+00> : vector<2x128xf32>
    %92 = tpu.matmul %90, %91, %cst_67 {dimension_numbers = #tpu.dot_dimension_numbers<[1], [0], [0], [1], [0, 0, 1, 1], [], []>} : vector<2x128xf32>, vector<128x128xf32>, vector<2x128xf32> -> vector<2x128xf32>
    %c0_68 = arith.constant 0 : index
    %c0_69 = arith.constant 0 : index
    %93 = vector.load %arg15[%c0_68, %c0_69] : memref<1x128xf32, #tpu.memory_space<vmem>>, vector<1x128xf32>
    %94 = vector.broadcast %93 : vector<1x128xf32> to vector<2x128xf32>
    %95 = arith.addf %92, %94 : vector<2x128xf32>
    %96 = tpu.iota {dimensions = array<i32: 1>} : vector<2x128xi32>
    %c4_i32 = arith.constant 4 : i32
    %97 = vector.broadcast %c4_i32 : i32 to vector<2x128xi32>
    %98 = arith.cmpi slt, %96, %97 : vector<2x128xi32>
    %cst_70 = arith.constant -1.000000e+30 : f32
    %99 = vector.broadcast %cst_70 : f32 to vector<2x128xf32>
    %100 = arith.select %98, %95, %99 : vector<2x128xi1>, vector<2x128xf32>
    %cst_71 = arith.constant dense<0xFF800000> : vector<2xf32>
    %101 = vector.multi_reduction <maximumf>, %100, %cst_71 [1] : vector<2x128xf32> to vector<2xf32>
    %102 = vector.shape_cast %101 : vector<2xf32> to vector<2x1xf32>
    %103 = vector.broadcast %102 : vector<2x1xf32> to vector<2x128xf32>
    %104 = arith.subf %100, %103 : vector<2x128xf32>
    %105 = math.exp %104 : vector<2x128xf32>
    %cst_72 = arith.constant 0.000000e+00 : f32
    %106 = vector.broadcast %cst_72 : f32 to vector<2x128xf32>
    %107 = arith.select %98, %105, %106 : vector<2x128xi1>, vector<2x128xf32>
    %cst_73 = arith.constant dense<0.000000e+00> : vector<2xf32>
    %108 = vector.multi_reduction <add>, %107, %cst_73 [1] : vector<2x128xf32> to vector<2xf32>
    %109 = vector.shape_cast %108 : vector<2xf32> to vector<2x1xf32>
    %110 = math.log %109 : vector<2x1xf32>
    %111 = arith.addf %102, %110 : vector<2x1xf32>
    %112 = vector.broadcast %111 : vector<2x1xf32> to vector<2x128xf32>
    %113 = arith.subf %95, %112 : vector<2x128xf32>
    %cst_74 = arith.constant 0.000000e+00 : f32
    %114 = vector.broadcast %cst_74 : f32 to vector<2x128xf32>
    %115 = arith.select %98, %113, %114 : vector<2x128xi1>, vector<2x128xf32>
    %c0_75 = arith.constant 0 : index
    %c0_76 = arith.constant 0 : index
    %116 = vector.load %arg16[%c0_75, %c0_76] : memref<2x128xf32, #tpu.memory_space<vmem>>, vector<2x128xf32>
    tpu.vector_store %arg16[%c0_75, %c0_76], %115 {strides = array<i32>} : memref<2x128xf32, #tpu.memory_space<vmem>>, vector<2x128xf32>,
    return
  }
}

</mosaic_0001>

<bundles_post_ra>
// kernel: tpu_custom_call.1
= control target key start
LH: loop header
LB: loop body
LE: loop exit
PB: predicated region body
PF: predicated region fallthrough
CT: control target
= control target key end

     0   :  { %s3064_s0 = inlined_call_operand.vmem [shape: f32[16,16], index: 0, kind: input, shape index: {}]   ;;  %s3065_s1 = inlined_call_operand.vmem [shape: f32[16,8], index: 1, kind: input, shape index: {}]   ;;  %s3066_s2 = inlined_call_operand.hbm [shape: bf16[16,16], index: 2, kind: input, shape index: {}]   ;;  %s3067_s3 = inlined_call_operand.vmem [shape: f32[16,16], index: 3, kind: input, shape index: {}]   ;;  %s3068_s4 = inlined_call_operand.hbm [shape: f32[2,16], index: 4, kind: input, shape index: {}]   ;;  %s3069_s5 = inlined_call_operand.vmem [shape: f32[16,128], index: 5, kind: input, shape index: {}]   ;;  %s3070_s6 = inlined_call_operand.vmem [shape: f32[8,128], index: 6, kind: input, shape index: {}]   ;;  %s3071_s7 = inlined_call_operand.hbm [shape: f32[2,256,128], index: 7, kind: input, shape index: {}]   ;;  %s3072_s8 = inlined_call_operand.hbm [shape: f32[2,128,128], index: 8, kind: input, shape index: {}]   ;;  %s3073_s9 = inlined_call_operand.hbm [shape: f32[2,128,128], index: 9, kind: input, shape index: {}]   ;;  %s3074_s10 = inlined_call_operand.vmem [shape: f32[2,3,128], index: 10, kind: input, shape index: {}]   ;;  %s3075_s11 = inlined_call_operand.hbm [shape: f32[256,128], index: 11, kind: input, shape index: {}]   ;;  %s3076_s12 = inlined_call_operand.hbm [shape: f32[128,128], index: 12, kind: input, shape index: {}]   ;;  %s3077_s13 = inlined_call_operand.hbm [shape: f32[128,128], index: 13, kind: input, shape index: {}]   ;;  %s3078_s14 = inlined_call_operand.vmem [shape: f32[4,128], index: 14, kind: input, shape index: {}]   ;;  %s3079_s15 = inlined_call_operand.vmem [shape: f32[1,128], index: 15, kind: input, shape index: {}]   ;;  %s3080_s16 = inlined_call_operand.hbm [shape: f32[2,128], index: 16, kind: output, shape index: {}]  }
   0x1   :  { %3082 = sst [smem:[#allocation23_spill]] %s3064_s0 }
   0x2   :  { %21 = vsyncpa [#allocation3], 0 }
   0x3   :  { %22 = vsyncpa [#allocation6], 0 }
   0x4   :  { %23 = vsyncpa [#allocation9], 0 }
   0x5   :  { %24 = vsyncpa [#allocation12], 0 }
   0x6   :  { %25 = vsyncpa [#allocation15], 0 }
   0x7   :  { %26 = vsyncpa [#allocation4], 0  ;;  %s2666_s21 = smov [#allocation5]   ;;  %s2456_s25 = scalar_lea.hbm %s3068_s4, 32 }
   0x8   :  { %s51_s22 = sshll.u32 %s2666_s21, 4  ;;  %p2457_p0 = scmp.ne.s32.totalorder %s3068_s4, %s2456_s25  ;;  %s52_s22 = int_to_ptr.vmem [resolvable:$true] %s51_s22 }
   0x9   :  { %p2460_p1 = scmp.lt.u32.totalorder %s2456_s25, %s3068_s4 }
   0xb   :  { %p2462_p2 = pnand %p2460_p1, %p2457_p0 }
   0xd   :  { %2465 = shalt.err (!%p2462_p2)
}
   0xe   :  { %s2466_s30 = scalar_lea.vmem %s52_s22, 32  ;;  %p2471_p4 = scmp.lt.s32.totalorder %s52_s22, %s52_s22 }
   0xf   :  { %p2467_p3 = scmp.ne.s32.totalorder %s52_s22, %s2466_s30  ;;  %p2472_p5 = scmp.lt.s32.totalorder %s2466_s30, %s2466_s30 }
  0x11   :  { %p2473_p6 = por %p2472_p5, %p2471_p4 }
  0x13   :  { %p2474_p7 = pnand %p2473_p6, %p2467_p3 }
  0x15   :  { %2477 = shalt.err (!%p2474_p7)
}
  0x16   :  { %54 = dma.hbm_to_vmem [thread:$0]  %s3068_s4, 32, %s52_s22, [#allocation6]  }
  0x17   :  { %s2667_s18 = smov [#allocation8]   ;;  %s2668_s20 = smov [#allocation11]  }
  0x18   :  { %s76_s19 = sshll.u32 %s2667_s18, 4  ;;  %s102_s21 = sshll.u32 %s2668_s20, 4  ;;  %s77_s19 = int_to_ptr.vmem [resolvable:$true] %s76_s19  ;;  %s103_s21 = int_to_ptr.vmem [resolvable:$true] %s102_s21 }
  0x19   :  { %s2478_s25 = scalar_lea.hbm %s3072_s8, 4096 }
  0x1a   :  { %p2479_p8 = scmp.ne.s32.totalorder %s3072_s8, %s2478_s25  ;;  %p2482_p9 = scmp.lt.u32.totalorder %s2478_s25, %s3072_s8 }
  0x1c   :  { %p2484_p10 = pnand %p2482_p9, %p2479_p8 }
  0x1e   :  { %2487 = shalt.err (!%p2484_p10)
}
  0x1f   :  { %s2488_s4 = scalar_lea.vmem %s77_s19, 4096  ;;  %p2493_p12 = scmp.lt.s32.totalorder %s77_s19, %s77_s19 }
  0x20   :  { %p2489_p11 = scmp.ne.s32.totalorder %s77_s19, %s2488_s4  ;;  %p2494_p13 = scmp.lt.s32.totalorder %s2488_s4, %s2488_s4 }
  0x22   :  { %p2495_p0 = por %p2494_p13, %p2493_p12 }
  0x24   :  { %p2496_p1 = pnand %p2495_p0, %p2489_p11 }
  0x26   :  { %2499 = shalt.err (!%p2496_p1)
}
  0x27   :  { %s2669_s22 = smov 128   ;;  %s2670_s30 = smov 8  }
  0x28   :  { %82 = dma.hbm_to_vmem [thread:$0]  %s3072_s8, 4096, %s77_s19, [#allocation9], %s2669_s22, %s2669_s22, %s2670_s30  }
  0x29   :  { %s2500_s23 = scalar_lea.hbm %s3075_s11, 4096 }
  0x2a   :  { %p2501_p2 = scmp.ne.s32.totalorder %s3075_s11, %s2500_s23  ;;  %p2504_p3 = scmp.lt.u32.totalorder %s2500_s23, %s3075_s11 }
  0x2c   :  { %p2506_p4 = pnand %p2504_p3, %p2501_p2 }
  0x2e   :  { %2509 = shalt.err (!%p2506_p4)
}
  0x2f   :  { %s2510_s28 = scalar_lea.vmem %s103_s21, 4096  ;;  %p2515_p6 = scmp.lt.s32.totalorder %s103_s21, %s103_s21 }
  0x30   :  { %p2511_p5 = scmp.ne.s32.totalorder %s103_s21, %s2510_s28  ;;  %p2516_p7 = scmp.lt.s32.totalorder %s2510_s28, %s2510_s28 }
  0x32   :  { %p2517_p8 = por %p2516_p7, %p2515_p6 }
  0x34   :  { %p2518_p9 = pnand %p2517_p8, %p2511_p5 }
  0x36   :  { %2521 = shalt.err (!%p2518_p9)
}
  0x37   :  { %108 = dma.hbm_to_vmem [thread:$0]  %s3075_s11, 4096, %s103_s21, [#allocation12], %s2669_s22, %s2669_s22, %s2670_s30  }
  0x38   :  { %s2671_s29 = smov [#allocation2]   ;;  %s2522_s18 = scalar_lea.hbm %s3066_s2, 128 }
  0x39   :  { %s36_s4 = sshll.u32 %s2671_s29, 4  ;;  %p2523_p10 = scmp.ne.s32.totalorder %s3066_s2, %s2522_s18  ;;  %s37_s4 = int_to_ptr.vmem [resolvable:$true] %s36_s4 }
  0x3a   :  { %p2526_p11 = scmp.lt.u32.totalorder %s2522_s18, %s3066_s2 }
  0x3c   :  { %p2528_p12 = pnand %p2526_p11, %p2523_p10 }
  0x3e   :  { %2531 = shalt.err (!%p2528_p12)
}
  0x3f   :  { %s2532_s26 = scalar_lea.vmem %s37_s4, 128  ;;  %p2537_p0 = scmp.lt.s32.totalorder %s37_s4, %s37_s4 }
  0x40   :  { %p2533_p13 = scmp.ne.s32.totalorder %s37_s4, %s2532_s26  ;;  %p2538_p1 = scmp.lt.s32.totalorder %s2532_s26, %s2532_s26 }
  0x42   :  { %p2539_p2 = por %p2538_p1, %p2537_p0 }
  0x44   :  { %p2540_p3 = pnand %p2539_p2, %p2533_p13 }
  0x46   :  { %2543 = shalt.err (!%p2540_p3)
}
  0x47   :  { %s2672_s11 = smov 64   ;;  %s2673_s21 = smov 4  }
  0x48   :  { %42 = dma.hbm_to_vmem [thread:$0]  %s3066_s2, 128, %s37_s4, [#allocation3], %s2672_s11, %s2672_s11, %s2673_s21  }
  0x49   :  { %s2674_s8 = smov [#allocation7]   ;;  %s2675_s29 = smov [#allocation10]  }
  0x4a   :  { %s64_s19 = sshll.u32 %s2674_s8, 4  ;;  %s88_s0 = sshll.u32 %s2675_s29, 4  ;;  %s65_s19 = int_to_ptr.vmem [resolvable:$true] %s64_s19  ;;  %s2822_s0 = int_to_ptr.vmem [resolvable:$true] %s88_s0 }
  0x4b   :  { %s2544_s20 = scalar_lea.hbm %s3071_s7, 8192 }
  0x4c   :  { %p2545_p4 = scmp.ne.s32.totalorder %s3071_s7, %s2544_s20  ;;  %p2548_p5 = scmp.lt.u32.totalorder %s2544_s20, %s3071_s7 }
  0x4e   :  { %p2550_p6 = pnand %p2548_p5, %p2545_p4 }
  0x50   :  { %2553 = shalt.err (!%p2550_p6)
}
  0x51   :  { %s2554_s2 = scalar_lea.vmem %s65_s19, 8192  ;;  %p2559_p8 = scmp.lt.s32.totalorder %s65_s19, %s65_s19 }
  0x52   :  { %p2555_p7 = scmp.ne.s32.totalorder %s65_s19, %s2554_s2  ;;  %p2560_p9 = scmp.lt.s32.totalorder %s2554_s2, %s2554_s2 }
  0x54   :  { %p2561_p10 = por %p2560_p9, %p2559_p8 }
  0x56   :  { %p2562_p11 = pnand %p2561_p10, %p2555_p7 }
  0x58   :  { %2565 = shalt.err (!%p2562_p11)
}
  0x59   :  { %70 = dma.hbm_to_vmem [thread:$0]  %s3071_s7, 8192, %s65_s19, [#allocation6], %s2669_s22, %s2669_s22, %s2670_s30  }
  0x5a   :  { %s2566_s28 = scalar_lea.hbm %s3073_s9, 4096 }
  0x5b   :  { %p2567_p12 = scmp.ne.s32.totalorder %s3073_s9, %s2566_s28  ;;  %p2570_p13 = scmp.lt.u32.totalorder %s2566_s28, %s3073_s9 }
  0x5d   :  { %p2572_p0 = pnand %p2570_p13, %p2567_p12 }
  0x5f   :  { %2575 = shalt.err (!%p2572_p0)
}
  0x60   :  { %s2576_s20 = scalar_lea.vmem %s2822_s0, 4096  ;;  %p2581_p2 = scmp.lt.s32.totalorder %s2822_s0, %s2822_s0 }
  0x61   :  { %p2577_p1 = scmp.ne.s32.totalorder %s2822_s0, %s2576_s20  ;;  %p2582_p3 = scmp.lt.s32.totalorder %s2576_s20, %s2576_s20 }
  0x63   :  { %p2583_p4 = por %p2582_p3, %p2581_p2 }
  0x65   :  { %p2584_p5 = pnand %p2583_p4, %p2577_p1 }
  0x67   :  { %2587 = shalt.err (!%p2584_p5)
}
  0x68   :  { %94 = dma.hbm_to_vmem [thread:$0]  %s3073_s9, 4096, %s2822_s0, [#allocation9], %s2669_s22, %s2669_s22, %s2670_s30  }
  0x69   :  { %s2676_s23 = smov [#allocation13]   ;;  %s2677_s25 = smov [#allocation14]  }
  0x6a   :  { %s114_s24 = sshll.u32 %s2676_s23, 4  ;;  %s126_s26 = sshll.u32 %s2677_s25, 4  ;;  %s115_s24 = int_to_ptr.vmem [resolvable:$true] %s114_s24  ;;  %s2859_s26 = int_to_ptr.vmem [resolvable:$true] %s126_s26 }
  0x6b   :  { %s2588_s11 = scalar_lea.hbm %s3076_s12, 2048 }
  0x6c   :  { %p2589_p6 = scmp.ne.s32.totalorder %s3076_s12, %s2588_s11  ;;  %p2592_p7 = scmp.lt.u32.totalorder %s2588_s11, %s3076_s12 }
  0x6e   :  { %p2594_p8 = pnand %p2592_p7, %p2589_p6 }
  0x70   :  { %2597 = shalt.err (!%p2594_p8)
}
  0x71   :  { %s2598_s9 = scalar_lea.vmem %s115_s24, 2048  ;;  %p2603_p10 = scmp.lt.s32.totalorder %s115_s24, %s115_s24 }
  0x72   :  { %p2599_p9 = scmp.ne.s32.totalorder %s115_s24, %s2598_s9  ;;  %p2604_p11 = scmp.lt.s32.totalorder %s2598_s9, %s2598_s9 }
  0x74   :  { %p2605_p12 = por %p2604_p11, %p2603_p10 }
  0x76   :  { %p2606_p13 = pnand %p2605_p12, %p2599_p9 }
  0x78   :  { %2609 = shalt.err (!%p2606_p13)
}
  0x79   :  { %120 = dma.hbm_to_vmem [thread:$0]  %s3076_s12, 2048, %s115_s24, [#allocation12], %s2669_s22, %s2669_s22, %s2670_s30  }
  0x7a   :  { %s2610_s20 = scalar_lea.hbm %s3077_s13, 2048 }
  0x7b   :  { %p2611_p0 = scmp.ne.s32.totalorder %s3077_s13, %s2610_s20  ;;  %p2614_p1 = scmp.lt.u32.totalorder %s2610_s20, %s3077_s13 }
  0x7d   :  { %p2616_p2 = pnand %p2614_p1, %p2611_p0 }
  0x7f   :  { %2619 = shalt.err (!%p2616_p2)
}
  0x80   :  { %s2620_s2 = scalar_lea.vmem %s2859_s26, 2048  ;;  %p2625_p4 = scmp.lt.s32.totalorder %s2859_s26, %s2859_s26 }
  0x81   :  { %p2621_p3 = scmp.ne.s32.totalorder %s2859_s26, %s2620_s2  ;;  %p2626_p5 = scmp.lt.s32.totalorder %s2620_s2, %s2620_s2 }
  0x83   :  { %p2627_p6 = por %p2626_p5, %p2625_p4 }
  0x85   :  { %p2628_p7 = pnand %p2627_p6, %p2621_p3 }
  0x87   :  { %2631 = shalt.err (!%p2628_p7)
}
  0x88   :  { %132 = dma.hbm_to_vmem [thread:$0]  %s3077_s13, 2048, %s2859_s26, [#allocation15], %s2669_s22, %s2669_s22, %s2670_s30  }
  0x89   :  { %2654 = dma.done.wait [#allocation3], 128  }
  0x8a   :  { %2655 = vsyncadd [#allocation3], 4294967168 }
  0x8b   :  { %2656 = dma.done.wait [#allocation6], 8224  }
  0x8c   :  { %2657 = vsyncadd [#allocation6], 4294959072 }
  0x8d   :  { %2658 = dma.done.wait [#allocation9], 8192  }
  0x8e   :  { %2659 = vsyncadd [#allocation9], 4294959104 }
  0x8f   :  { %2660 = dma.done.wait [#allocation12], 6144  }
  0x90   :  { %2661 = vsyncadd [#allocation12], 4294961152 }
  0x91   :  { %2662 = dma.done.wait [#allocation15], 2048  }
  0x92   :  { %2663 = vsyncadd [#allocation15], 4294965248  ;;  %vm175_vm0 = vcmask 130048   ;;  %v168_v0 = vld [vmem:[%s3069_s5] sm:$0xff]  ;;  %v169_v1 = vld [vmem:[%s3069_s5 + $0x8] sm:$0xff]  ;;  %s3083_s30 = sld [smem:[#allocation23_spill]] }
  0x93   :  { %v2139_v3 = vpack.c.bf16 %v169_v1, %v168_v0  ;;  %v259_v4 = vld [vmem:[%s3070_s6] sm:$0xff]  ;;  %vm265_vm1 = vcmask 64512   ;;  %v258_v7 = vld [vmem:[%s3065_s1 + $0x8] sm:$0xff]  ;;  %v2678_v8 = vmov 0   ;;  %v364_v10 = vld [vmem:[#allocation7 + $0x88] sm:$0xff]  ;;  %vm2680_vm2 = vmmov 0  }
  0x94   :  { %v257_v6 = vld [vmem:[%s3065_s1] sm:$0xff]  ;;  %v363_v9 = vld [vmem:[#allocation7 + $0x80] sm:$0xff]  ;;  %v348_v13 = vld [vmem:[#allocation7 + $0x8] sm:$0xff]  ;;  %vm1604_vm4 = vcmask 1041408  }
  0x95   :  { %2140 = vmatprep.subr.bf16.mxu1 %v2139_v3  ;;  %v347_v11 = vld [vmem:[#allocation7] sm:$0xff]  ;;  %v2143_v12 = vpack.c.bf16 %v364_v10, %v363_v9  ;;  %v365_v14 = vld [vmem:[#allocation7 + $0x90] sm:$0xff]  ;;  %v366_v15 = vld [vmem:[#allocation7 + $0x98] sm:$0xff] }
  0x96   :  { %2142 = vmatpush3.bf16.msra.mxu1 %v2139_v3  ;;  %v2145_v16 = vpack.c.bf16 %v348_v13, %v347_v11  ;;  %v2147_v17 = vpack.c.bf16 %v366_v15, %v365_v14  ;;  %v349_v18 = vld [vmem:[#allocation7 + $0x10] sm:$0xff]  ;;  %v350_v19 = vld [vmem:[#allocation7 + $0x18] sm:$0xff]  ;;  %v367_v20 = vld [vmem:[#allocation7 + $0xa0] sm:$0xff] }
  0x97   :  { %1903 = vmatprep.subr.mxu1 %v259_v4  ;;  %2144 = vmatprep.subr.bf16.mxu0 %v2143_v12  ;;  %v368_v21 = vld [vmem:[#allocation7 + $0xa8] sm:$0xff]  ;;  %v2149_v22 = vpack.c.bf16 %v350_v19, %v349_v18  ;;  %v351_v24 = vld [vmem:[#allocation7 + $0x20] sm:$0xff]  ;;  %v369_v26 = vld [vmem:[#allocation7 + $0xb0] sm:$0xff] }
  0x98   :  { %v166_v2 = vld [vmem:[%s3083_s30] sm:$0xff]  ;;  %v167_v5 = vld [vmem:[%s3083_s30 + $0x8] sm:$0xff]  ;;  %2146 = vmatpush3.bf16.msra.mxu0 %v2145_v16  ;;  %v2151_v23 = vpack.c.bf16 %v368_v21, %v367_v20  ;;  %v352_v25 = vld [vmem:[#allocation7 + $0x28] sm:$0xff] }
  0x99   :  { %1900 = vmatprep.mubr.msk.f32.mxu1 %vm175_vm0, %v166_v2  ;;  %2148 = vmatprep.subr.bf16.mxu0 %v2147_v17  ;;  %v370_v27 = vld [vmem:[#allocation7 + $0xb8] sm:$0xff]  ;;  %v2153_v28 = vpack.c.bf16 %v352_v25, %v351_v24  ;;  %v353_v30 = vld [vmem:[#allocation7 + $0x30] sm:$0xff]  ;;  %v371_v32 = vld [vmem:[#allocation7 + $0xc0] sm:$0xff] }
  0x9a   :  { %1901 = vmatmul.mubr.msk.f32.vlgmr.msra.gmra.mrb[0].mxu1 %vm175_vm0, %v167_v5  ;;  %v2155_v29 = vpack.c.bf16 %v370_v27, %v369_v26  ;;  %v354_v31 = vld [vmem:[#allocation7 + $0x38] sm:$0xff]  ;;  %v372_v33 = vld [vmem:[#allocation7 + $0xc8] sm:$0xff]  ;;  %v355_v36 = vld [vmem:[#allocation7 + $0x40] sm:$0xff] }
  0x9b   :  { %1904 = vmatpush3.msra.mxu1 %v259_v4  ;;  %1905 = vmatprep.mubr.msk.f32.mxu1 %vm265_vm1, %v257_v6  ;;  %v2157_v34 = vpack.c.bf16 %v354_v31, %v353_v30  ;;  %v2159_v35 = vpack.c.bf16 %v372_v33, %v371_v32  ;;  %v356_v37 = vld [vmem:[#allocation7 + $0x48] sm:$0xff]  ;;  %v373_v38 = vld [vmem:[#allocation7 + $0xd0] sm:$0xff]  ;;  %v374_v39 = vld [vmem:[#allocation7 + $0xd8] sm:$0xff] }
  0x9c   :  { %2150 = vmatpush3.bf16.msra.mxu0 %v2149_v22  ;;  %v2161_v40 = vpack.c.bf16 %v356_v37, %v355_v36  ;;  %v2163_v41 = vpack.c.bf16 %v374_v39, %v373_v38  ;;  %v357_v42 = vld [vmem:[#allocation7 + $0x50] sm:$0xff]  ;;  %v358_v43 = vld [vmem:[#allocation7 + $0x58] sm:$0xff]  ;;  %v375_v44 = vld [vmem:[#allocation7 + $0xe0] sm:$0xff] }
  0x9d   :  { %2152 = vmatprep.subr.bf16.mxu0 %v2151_v23  ;;  %v376_v45 = vld [vmem:[#allocation7 + $0xe8] sm:$0xff]  ;;  %v2165_v46 = vpack.c.bf16 %v358_v43, %v357_v42  ;;  %v359_v48 = vld [vmem:[#allocation7 + $0x60] sm:$0xff]  ;;  %v1640_v53 = vld [vmem:[%s3078_s14] ss:$0 sm:$0xff] }
  0x9e   :  { %1906 = vmatmul.mubr.msk.f32.vlgmr.msra.gmra.mrb[2].mxu1 %vm265_vm1, %v258_v7  ;;  %v2167_v47 = vpack.c.bf16 %v376_v45, %v375_v44  ;;  %v360_v49 = vld [vmem:[#allocation7 + $0x68] sm:$0xff]  ;;  %v1643_v54 = vld [vmem:[%s3078_s14 + $0x1] ss:$0 sm:$0xff]  ;;  %v378_v1 = vld [vmem:[#allocation7 + $0xf8] sm:$0xff] }
  0x9f   :  { %454 = vmatprep.mubr.bf16.mxu1 %v2678_v8  ;;  %v2169_v50 = vpack.c.bf16 %v360_v49, %v359_v48  ;;  %v2935_v63 = vld [vmem:[#allocation2] sm:$0xff]   ;;  %v395_v6 = vld [vmem:[#allocation10] sm:$0xff]  ;;  %v396_v7 = vld [vmem:[#allocation10 + $0x8] sm:$0xff] }
  0xa0   :  { %2154 = vmatpush3.bf16.msra.mxu0 %v2153_v28  ;;  %v377_v0 = vld [vmem:[#allocation7 + $0xf0] sm:$0xff]  ;;  %v362_v4 = vld [vmem:[#allocation7 + $0x78] sm:$0xff]  ;;  %v2207_v9 = vpack.c.bf16 %v396_v7, %v395_v6  ;;  %v379_v10 = vld [vmem:[#allocation8] sm:$0xff] }
  0xa1   :  { %2156 = vmatprep.subr.bf16.mxu0 %v2155_v29  ;;  %v2171_v2 = vpack.c.bf16 %v378_v1, %v377_v0  ;;  %v361_v3 = vld [vmem:[#allocation7 + $0x70] sm:$0xff]  ;;  %v380_v11 = vld [vmem:[#allocation8 + $0x8] sm:$0xff]  ;;  %v382_v14 = vld [vmem:[#allocation8 + $0x18] sm:$0xff]  ;;  %v469_v1 = vlaneseq }
  0xa2   :  { %v2173_v5 = vpack.c.bf16 %v362_v4, %v361_v3  ;;  %v381_v12 = vld [vmem:[#allocation8 + $0x10] sm:$0xff]  ;;  %v2175_v13 = vpack.c.bf16 %v380_v11, %v379_v10  ;;  %v383_v16 = vld [vmem:[#allocation8 + $0x20] sm:$0xff]  ;;  %v384_v17 = vld [vmem:[#allocation8 + $0x28] sm:$0xff] }
  0xa3   :  { %v2179_v15 = vpack.c.bf16 %v382_v14, %v381_v12  ;;  %v2183_v18 = vpack.c.bf16 %v384_v17, %v383_v16  ;;  %v385_v19 = vld [vmem:[#allocation8 + $0x30] sm:$0xff]  ;;  %v386_v20 = vld [vmem:[#allocation8 + $0x38] sm:$0xff]  ;;  %v387_v22 = vld [vmem:[#allocation8 + $0x40] sm:$0xff] }
  0xa4   :  { %2158 = vmatpush3.bf16.msra.mxu0 %v2157_v34  ;;  %v2187_v21 = vpack.c.bf16 %v386_v20, %v385_v19  ;;  %v388_v23 = vld [vmem:[#allocation8 + $0x48] sm:$0xff]  ;;  %v397_v26 = vld [vmem:[#allocation10 + $0x10] sm:$0xff]  ;;  %v398_v27 = vld [vmem:[#allocation10 + $0x18] sm:$0xff] }
  0xa5   :  { %2160 = vmatprep.subr.bf16.mxu0 %v2159_v35  ;;  %v2191_v24 = vpack.c.bf16 %v388_v23, %v387_v22  ;;  %v2211_v33 = vpack.c.bf16 %v398_v27, %v397_v26  ;;  %v399_v35 = vld [vmem:[#allocation10 + $0x20] sm:$0xff]  ;;  %v400_v36 = vld [vmem:[#allocation10 + $0x28] sm:$0xff]  ;;  %v401_v39 = vld [vmem:[#allocation10 + $0x30] sm:$0xff] }
  0xa6   :  { %v2215_v38 = vpack.c.bf16 %v400_v36, %v399_v35  ;;  %v403_v42 = vld [vmem:[#allocation10 + $0x40] sm:$0xff]  ;;  %v404_v43 = vld [vmem:[#allocation10 + $0x48] sm:$0xff]  ;;  %v405_v45 = vld [vmem:[#allocation10 + $0x50] sm:$0xff] }
  0xa7   :  { %v2223_v44 = vpack.c.bf16 %v404_v43, %v403_v42  ;;  %v407_v48 = vld [vmem:[#allocation10 + $0x60] sm:$0xff]  ;;  %v408_v49 = vld [vmem:[#allocation10 + $0x68] sm:$0xff]  ;;  %v411_v3 = vld [vmem:[%s3074_s10] sm:$0x7] }
  0xa8   :  { %2162 = vmatpush3.bf16.msra.mxu0 %v2161_v40  ;;  %v402_v40 = vld [vmem:[#allocation10 + $0x38] sm:$0xff]  ;;  %v811_v35 = vld [vmem:[#allocation7 + $0x188] sm:$0xff]  ;;  %v812_v43 = vld [vmem:[#allocation7 + $0x190] sm:$0xff] }
  0xa9   :  { %2164 = vmatprep.subr.bf16.mxu0 %v2163_v41  ;;  %v2219_v41 = vpack.c.bf16 %v402_v40, %v401_v39  ;;  %v2956_v16 = vld [vmem:[%s3067_s3] sm:$0xff]  ;;  %v2963_v20 = vld [vmem:[%s3067_s3 + $0x8] sm:$0xff] }
  0xaa   :  { %v794_v40 = vld [vmem:[#allocation7 + $0x100] sm:$0xff] }
  0xac   :  { %2166 = vmatpush3.bf16.msra.mxu0 %v2165_v46  ;;  %v406_v46 = vld [vmem:[#allocation10 + $0x58] sm:$0xff] }
  0xad   :  { %2168 = vmatprep.subr.bf16.mxu0 %v2167_v47  ;;  %v2227_v47 = vpack.c.bf16 %v406_v46, %v405_v45 }
  0xb0   :  { %2170 = vmatpush3.bf16.msra.mxu0 %v2169_v50  ;;  %v2231_v50 = vpack.c.bf16 %v408_v49, %v407_v48  ;;  %v797_v48 = vld [vmem:[#allocation7 + $0x118] sm:$0xff]  ;;  %v814_v49 = vld [vmem:[#allocation7 + $0x1a0] sm:$0xff] }
  0xb1   :  { %2172 = vmatprep.subr.bf16.mxu0 %v2171_v2  ;;  %v2945_v2 = vshrl.u32 %v469_v1, 7 }
  0xb3   :  { %v708_v23 = vsub.s32 2, %v2945_v2 }
  0xb4   :  { %2174 = vmatpush3.bf16.msra.mxu0 %v2173_v5 }
  0xb5   :  { %2208 = vmatprep.subr.bf16.mxu0 %v2207_v9 }
 0x16d   :  { %v1902_v51 = vpop.f32.mrb[0].mxu1 }
 0x16e   :  { %v248_v52 = vpop.f32.mrb[1].mxu1  ;;  %v2926_v56 = vadd.f32 %v1902_v51, %v1640_v53  ;;  %v409_v51 = vld [vmem:[#allocation10 + $0x70] sm:$0xff] }
 0x16f   :  { %v249_v57 = vadd.f32 %v1640_v53, %v248_v52  ;;  %v410_v52 = vld [vmem:[#allocation10 + $0x78] sm:$0xff] }
 0x170   :  { %v2235_v53 = vpack.c.bf16 %v410_v52, %v409_v51 }
 0x171   :  { %v1907_v55 = vpop.f32.mrb[2].mxu1  ;;  %v412_v62 = vpack.c.bf16 %v2926_v56, %v249_v57 }
 0x172   :  { %v2928_v58 = vadd.f32 %v1907_v55, %v1643_v54  ;;  %v338_v59 = vpop.f32.mrb[3].mxu1  ;;  %v390_v55 = vld [vmem:[#allocation8 + $0x58] sm:$0xff] }
 0x173   :  { %v2930_v60 = vadd.f32 %v1643_v54, %v338_v59  ;;  %v389_v54 = vld [vmem:[#allocation8 + $0x50] sm:$0xff]  ;;  %v392_v59 = vld [vmem:[#allocation8 + $0x68] sm:$0xff] }
 0x175   :  { %v413_v61 = vpack.c.bf16 %v2928_v58, %v2930_v60 }
 0x177   :  { %422 = vmatprep.subr.bf16.mxu1 %v413_v61  ;;  %v393_v61 = vld [vmem:[#allocation8 + $0x70] sm:$0xff] }
 0x178   :  { %423 = vmatpush1.bf16.msra.mxu1 %v412_v62  ;;  %v394_v62 = vld [vmem:[#allocation8 + $0x78] sm:$0xff] }
 0x179   :  { %2176 = vmatprep.subr.bf16.mxu1 %v2175_v13  ;;  %v2203_v0 = vpack.c.bf16 %v394_v62, %v393_v61  ;;  %v801_v61 = vld [vmem:[#allocation7 + $0x138] sm:$0xff]  ;;  %v818_v62 = vld [vmem:[#allocation7 + $0x1c0] sm:$0xff] }
 0x17b   :  { %1647 = vmatmul.mubr.msk.bf16.vlgmr.msra.gmra.mrb[4].mxu1 %vm175_vm0, %v2935_v63 }
 0x17c   :  { %2178 = vmatpush3.bf16.msra.mxu1 %v2175_v13 }
 0x17d   :  { %2180 = vmatprep.subr.bf16.mxu1 %v2179_v15 }
 0x180   :  { %2182 = vmatpush3.bf16.msra.mxu1 %v2179_v15 }
 0x181   :  { %2184 = vmatprep.subr.bf16.mxu1 %v2183_v18 }
 0x184   :  { %2186 = vmatpush3.bf16.msra.mxu1 %v2183_v18 }
 0x185   :  { %2188 = vmatprep.subr.bf16.mxu1 %v2187_v21 }
 0x188   :  { %2190 = vmatpush3.bf16.msra.mxu1 %v2187_v21 }
 0x189   :  { %2192 = vmatprep.subr.bf16.mxu1 %v2191_v24 }
 0x18c   :  { %2194 = vmatpush3.bf16.msra.mxu1 %v2191_v24  ;;  %v709_v24 = vrot.slane %v411_v3, %v708_v23 }
 0x24e   :  { %v456_v25 = vpop.f32.mrb[4].mxu1 }
 0x24f   :  { %v458_v28 = vpop.f32.mrb[5].mxu1  ;;  %v465_v31 = vadd.f32 %v456_v25, %v249_v57  ;;  %v391_v57 = vld [vmem:[#allocation8 + $0x60] sm:$0xff]  ;;  %v552_v25 = vsub.s32 1, %v2945_v2 }
 0x250   :  { %v460_v29 = vpop.f32.mrb[6].mxu1  ;;  %v466_v30 = vadd.f32 %v458_v28, %v2930_v60 }
 0x251   :  { %v462_v32 = vpop.f32.mrb[7].mxu1  ;;  %v467_v37 = vadd.f32 %v460_v29, %v2926_v56  ;;  %v2195_v56 = vpack.c.bf16 %v390_v55, %v389_v54  ;;  %v799_v54 = vld [vmem:[#allocation7 + $0x128] sm:$0xff]  ;;  %v816_v55 = vld [vmem:[#allocation7 + $0x1b0] sm:$0xff] }
 0x252   :  { %v468_v34 = vadd.f32 %v462_v32, %v2928_v58  ;;  %537 = vmatprep.mubr.f32.mxu0 %v466_v30  ;;  %v553_v30 = vrot.slane %v411_v3, %v552_v25 }
 0x253   :  { %538 = vmatmul.mubr.f32.vlgmr.msra.gmra.mrb[0].mxu0 %v465_v31  ;;  %2196 = vmatprep.subr.bf16.mxu1 %v2195_v56 }
 0x254   :  { %2210 = vmatpush3.bf16.msra.mxu0 %v2207_v9  ;;  %542 = vmatprep.mubr.f32.mxu0 %v468_v34  ;;  %v810_v34 = vld [vmem:[#allocation7 + $0x180] sm:$0xff] }
 0x255   :  { %2212 = vmatprep.subr.bf16.mxu0 %v2211_v33  ;;  %2198 = vmatpush3.bf16.msra.mxu1 %v2195_v56  ;;  %v2243_v39 = vpack.c.bf16 %v811_v35, %v810_v34  ;;  %v817_v56 = vld [vmem:[#allocation7 + $0x1b8] sm:$0xff]  ;;  %v845_v34 = vld [vmem:[#allocation10 + $0x88] sm:$0xff] }
 0x257   :  { %543 = vmatmul.mubr.f32.gmra.mrb[2].mxu0 %v467_v37 }
 0x258   :  { %2214 = vmatpush3.bf16.msra.mxu0 %v2211_v33  ;;  %1975 = vmatprep.mubr.f32.mxu0 %v2930_v60  ;;  %v2199_v60 = vpack.c.bf16 %v392_v59, %v391_v57  ;;  %v2255_v59 = vpack.c.bf16 %v817_v56, %v816_v55  ;;  %v847_v55 = vld [vmem:[#allocation10 + $0x98] sm:$0xff] }
 0x259   :  { %2216 = vmatprep.subr.bf16.mxu0 %v2215_v38 }
 0x25a   :  { %2200 = vmatprep.subr.bf16.mxu1 %v2199_v60 }
 0x25b   :  { %2202 = vmatpush3.bf16.msra.mxu1 %v2199_v60  ;;  %v800_v60 = vld [vmem:[#allocation7 + $0x130] sm:$0xff] }
 0x25c   :  { %2218 = vmatpush3.bf16.msra.mxu0 %v2215_v38  ;;  %2204 = vmatprep.subr.bf16.mxu1 %v2203_v0 }
 0x25d   :  { %2220 = vmatprep.subr.bf16.mxu0 %v2219_v41 }
 0x25f   :  { %2206 = vmatpush3.bf16.msra.mxu1 %v2203_v0  ;;  %v819_v0 = vld [vmem:[#allocation7 + $0x1c8] sm:$0xff] }
 0x260   :  { %2222 = vmatpush3.bf16.msra.mxu0 %v2219_v41  ;;  %v795_v41 = vld [vmem:[#allocation7 + $0x108] sm:$0xff] }
 0x261   :  { %2224 = vmatprep.subr.bf16.mxu0 %v2223_v44  ;;  %v2245_v45 = vpack.c.bf16 %v795_v41, %v794_v40  ;;  %v829_v40 = vld [vmem:[#allocation8 + $0x90] sm:$0xff] }
 0x264   :  { %2226 = vmatpush3.bf16.msra.mxu0 %v2223_v44  ;;  %v813_v44 = vld [vmem:[#allocation7 + $0x198] sm:$0xff] }
 0x265   :  { %2228 = vmatprep.subr.bf16.mxu0 %v2227_v47  ;;  %v2247_v46 = vpack.c.bf16 %v813_v44, %v812_v43  ;;  %v831_v44 = vld [vmem:[#allocation8 + $0xa0] sm:$0xff] }
 0x268   :  { %2230 = vmatpush3.bf16.msra.mxu0 %v2227_v47  ;;  %v796_v47 = vld [vmem:[#allocation7 + $0x110] sm:$0xff] }
 0x269   :  { %2232 = vmatprep.subr.bf16.mxu0 %v2231_v50  ;;  %v2249_v51 = vpack.c.bf16 %v797_v48, %v796_v47  ;;  %v833_v47 = vld [vmem:[#allocation8 + $0xb0] sm:$0xff]  ;;  %v834_v48 = vld [vmem:[#allocation8 + $0xb8] sm:$0xff] }
 0x26c   :  { %2234 = vmatpush3.bf16.msra.mxu0 %v2231_v50  ;;  %v815_v50 = vld [vmem:[#allocation7 + $0x1a8] sm:$0xff] }
 0x26d   :  { %2236 = vmatprep.subr.bf16.mxu0 %v2235_v53  ;;  %v2251_v52 = vpack.c.bf16 %v815_v50, %v814_v49  ;;  %v2287_v49 = vpack.c.bf16 %v834_v48, %v833_v47  ;;  %v835_v50 = vld [vmem:[#allocation8 + $0xc0] sm:$0xff]  ;;  %v1246_v48 = vld [vmem:[#allocation11 + $0x88] sm:$0xff] }
 0x270   :  { %2238 = vmatpush3.bf16.msra.mxu0 %v2235_v53  ;;  %v798_v53 = vld [vmem:[#allocation7 + $0x120] sm:$0xff] }
 0x271   :  { %v2253_v57 = vpack.c.bf16 %v799_v54, %v798_v53  ;;  %v846_v54 = vld [vmem:[#allocation10 + $0x90] sm:$0xff] }
 0x273   :  { %1976 = vmatmul.mubr.f32.vlgmr.msra.gmra.mrb[4].mxu0 %v2928_v58  ;;  %v471_v58 = vsub.s32 0, %v2945_v2  ;;  %v2681_v2 = vmov 0.0  }
 0x275   :  { %v472_v5 = vrot.slane %v411_v3, %v471_v58  ;;  %v2257_v3 = vpack.c.bf16 %v801_v61, %v800_v60 }
 0x326   :  { %v1697_v4 = vpop.f32.mrb[0].mxu0 }
 0x327   :  { %v1698_v6 = vpop.f32.mrb[1].mxu0 }
 0x328   :  { %v1699_v7 = vadd.f32 %v1698_v6, %v1697_v4  ;;  %v802_v4 = vld [vmem:[#allocation7 + $0x140] sm:$0xff]  ;;  %v820_v6 = vld [vmem:[#allocation7 + $0x1d0] sm:$0xff] }
 0x32a   :  { %v540_v9 = vadd.f32 %v1699_v7, %v472_v5  ;;  %v1700_v10 = vpop.f32.mrb[2].mxu0  ;;  %v821_v7 = vld [vmem:[#allocation7 + $0x1d8] sm:$0xff] }
 0x32b   :  { %v1701_v11 = vpop.f32.mrb[3].mxu0 }
 0x32c   :  { %v548_v12 = vmax.f32 %v540_v9, 0.0  ;;  %v1702_v13 = vadd.f32 %v1701_v11, %v1700_v10  ;;  %v2263_v10 = vpack.c.bf16 %v821_v7, %v820_v6  ;;  %v804_v11 = vld [vmem:[#allocation7 + $0x150] sm:$0xff]  ;;  %v851_v7 = vld [vmem:[#allocation10 + $0xb8] sm:$0xff] }
 0x32d   :  { %v850_v6 = vld [vmem:[#allocation10 + $0xb0] sm:$0xff] }
 0x32e   :  { %v545_v14 = vadd.f32 %v1702_v13, %v472_v5  ;;  %1940 = vmatprep.mubr.f32.mxu1 %v548_v12  ;;  %v803_v5 = vld [vmem:[#allocation7 + $0x148] sm:$0xff]  ;;  %v805_v12 = vld [vmem:[#allocation7 + $0x158] sm:$0xff]  ;;  %v822_v13 = vld [vmem:[#allocation7 + $0x1e0] sm:$0xff] }
 0x32f   :  { %v2261_v9 = vpack.c.bf16 %v803_v5, %v802_v4 }
 0x330   :  { %v549_v15 = vmax.f32 %v545_v14, 0.0  ;;  %v823_v14 = vld [vmem:[#allocation7 + $0x1e8] sm:$0xff] }
 0x332   :  { %1941 = vmatmul.mubr.f32.vlgmr.msra.gmra.mrb[8].mxu1 %v549_v15  ;;  %v2265_v15 = vpack.c.bf16 %v805_v12, %v804_v11  ;;  %v854_v11 = vld [vmem:[#allocation10 + $0xd0] sm:$0xff]  ;;  %v855_v12 = vld [vmem:[#allocation10 + $0xd8] sm:$0xff] }
 0x333   :  { %1982 = vmatprep.mubr.msk.f32.mxu1 %vm175_vm0, %v2956_v16 }
 0x346   :  { %v1977_v17 = vpop.f32.mrb[4].mxu0 }
 0x347   :  { %v697_v18 = vpop.f32.mrb[5].mxu0 }
 0x348   :  { %v2239_v19 = vpack.c.bf16 %v1977_v17, %v697_v18  ;;  %v2267_v17 = vpack.c.bf16 %v823_v14, %v822_v13  ;;  %v806_v18 = vld [vmem:[#allocation7 + $0x160] sm:$0xff]  ;;  %v857_v13 = vld [vmem:[#allocation10 + $0xe8] sm:$0xff] }
 0x34a   :  { %2240 = vmatprep.subr.bf16.mxu1 %v2239_v19 }
 0x34b   :  { %2242 = vmatpush3.bf16.msra.mxu1 %v2239_v19  ;;  %v807_v19 = vld [vmem:[#allocation7 + $0x168] sm:$0xff] }
 0x34e   :  { %1983 = vmatmul.mubr.msk.f32.vlgmr.msra.gmra.mrb[10].mxu1 %vm175_vm0, %v2963_v20 }
 0x34f   :  { %896 = vmatprep.mubr.bf16.mxu1 %v2678_v8 }
 0x405   :  { %v1942_v21 = vpop.f32.mrb[8].mxu1 }
 0x406   :  { %v620_v22 = vpop.f32.mrb[9].mxu1  ;;  %v2974_v31 = vadd.f32 %v1942_v21, %v553_v30  ;;  %v2269_v21 = vpack.c.bf16 %v807_v19, %v806_v18  ;;  %v837_v18 = vld [vmem:[#allocation8 + $0xd0] sm:$0xff]  ;;  %v838_v19 = vld [vmem:[#allocation8 + $0xd8] sm:$0xff] }
 0x407   :  { %v2976_v8 = vadd.f32 %v620_v22, %v553_v30  ;;  %v824_v22 = vld [vmem:[#allocation7 + $0x1f0] sm:$0xff]  ;;  %v844_v30 = vld [vmem:[#allocation10 + $0x80] sm:$0xff] }
 0x408   :  { %v630_v32 = vmax.f32 %v2974_v31, 0.0  ;;  %v2307_v35 = vpack.c.bf16 %v845_v34, %v844_v30  ;;  %v2327_v31 = vpack.c.bf16 %v855_v12, %v854_v11  ;;  %v1237_v11 = vld [vmem:[#allocation11 + $0x40] sm:$0xff]  ;;  %v1238_v12 = vld [vmem:[#allocation11 + $0x48] sm:$0xff] }
 0x409   :  { %v629_v33 = vmax.f32 %v2976_v8, 0.0  ;;  %v2319_v8 = vpack.c.bf16 %v851_v7, %v850_v6  ;;  %v1235_v6 = vld [vmem:[#allocation11 + $0x30] sm:$0xff]  ;;  %v1236_v7 = vld [vmem:[#allocation11 + $0x38] sm:$0xff] }
 0x40b   :  { %v862_v42 = vpack.c.bf16 %v630_v32, %v629_v33 }
 0x421   :  { %v1984_v26 = vpop.f32.mrb[10].mxu1 }
 0x422   :  { %v788_v27 = vadd.f32 %v1984_v26, %v709_v24  ;;  %v782_v28 = vpop.f32.mrb[11].mxu1 }
 0x423   :  { %v783_v29 = vadd.f32 %v782_v28, %v709_v24  ;;  %v825_v24 = vld [vmem:[#allocation7 + $0x1f8] sm:$0xff] }
 0x424   :  { %2444 = vtanh.f32 %v788_v27  ;;  %v2271_v26 = vpack.c.bf16 %v825_v24, %v824_v22  ;;  %v808_v27 = vld [vmem:[#allocation7 + $0x170] sm:$0xff]  ;;  %v809_v28 = vld [vmem:[#allocation7 + $0x178] sm:$0xff]  ;;  %v839_v22 = vld [vmem:[#allocation8 + $0xe0] sm:$0xff] }
 0x425   :  { %2446 = vtanh.f32 %v783_v29  ;;  %v2273_v29 = vpack.c.bf16 %v809_v28, %v808_v27  ;;  %v840_v24 = vld [vmem:[#allocation8 + $0xe8] sm:$0xff]  ;;  %v841_v27 = vld [vmem:[#allocation8 + $0xf0] sm:$0xff]  ;;  %v842_v28 = vld [vmem:[#allocation8 + $0xf8] sm:$0xff] }
 0x42e   :  { %v2980_v36 = vpop.eup %2444 }
 0x42f   :  { %v2982_v37 = vpop.eup %2446 }
 0x430   :  { %v863_v38 = vpack.c.bf16 %v2980_v36, %v2982_v37 }
 0x432   :  { %864 = vmatprep.subr.bf16.mxu1 %v863_v38  ;;  %v827_v38 = vld [vmem:[#allocation8 + $0x80] sm:$0xff] }
 0x433   :  { %865 = vmatpush1.bf16.msra.mxu1 %v862_v42  ;;  %v830_v42 = vld [vmem:[#allocation8 + $0x98] sm:$0xff] }
 0x434   :  { %2244 = vmatprep.subr.bf16.mxu1 %v2243_v39  ;;  %v828_v39 = vld [vmem:[#allocation8 + $0x88] sm:$0xff]  ;;  %v2279_v43 = vpack.c.bf16 %v830_v42, %v829_v40 }
 0x435   :  { %v2275_v41 = vpack.c.bf16 %v828_v39, %v827_v38 }
 0x436   :  { %1651 = vmatmul.mubr.msk.bf16.vlgmr.msra.gmra.mrb[12].mxu1 %vm175_vm0, %v2935_v63  ;;  %v2259_v63 = vpack.c.bf16 %v819_v0, %v818_v62  ;;  %v2311_v62 = vpack.c.bf16 %v847_v55, %v846_v54 }
 0x437   :  { %2246 = vmatpush3.bf16.msra.mxu1 %v2245_v45  ;;  %v832_v45 = vld [vmem:[#allocation8 + $0xa8] sm:$0xff]  ;;  %2276 = vmatprep.subr.bf16.mxu0 %v2275_v41 }
 0x438   :  { %2248 = vmatprep.subr.bf16.mxu1 %v2247_v46  ;;  %2278 = vmatpush3.bf16.msra.mxu0 %v2275_v41  ;;  %v2283_v46 = vpack.c.bf16 %v832_v45, %v831_v44 }
 0x439   :  { %2280 = vmatprep.subr.bf16.mxu0 %v2279_v43 }
 0x43b   :  { %2250 = vmatpush3.bf16.msra.mxu1 %v2249_v51  ;;  %v836_v51 = vld [vmem:[#allocation8 + $0xc8] sm:$0xff] }
 0x43c   :  { %2252 = vmatprep.subr.bf16.mxu1 %v2251_v52  ;;  %2282 = vmatpush3.bf16.msra.mxu0 %v2279_v43  ;;  %v2291_v52 = vpack.c.bf16 %v836_v51, %v835_v50  ;;  %v1230_v51 = vld [vmem:[#allocation11 + $0x8] sm:$0xff] }
 0x43d   :  { %2284 = vmatprep.subr.bf16.mxu0 %v2283_v46 }
 0x43f   :  { %2254 = vmatpush3.bf16.msra.mxu1 %v2253_v57 }
 0x440   :  { %2256 = vmatprep.subr.bf16.mxu1 %v2255_v59  ;;  %2286 = vmatpush3.bf16.msra.mxu0 %v2283_v46 }
 0x441   :  { %2288 = vmatprep.subr.bf16.mxu0 %v2287_v49 }
 0x443   :  { %2258 = vmatpush3.bf16.msra.mxu1 %v2257_v3  ;;  %v848_v3 = vld [vmem:[#allocation10 + $0xa0] sm:$0xff] }
 0x444   :  { %2260 = vmatprep.subr.bf16.mxu1 %v2259_v63  ;;  %2290 = vmatpush3.bf16.msra.mxu0 %v2287_v49  ;;  %v849_v63 = vld [vmem:[#allocation10 + $0xa8] sm:$0xff]  ;;  %v1229_v49 = vld [vmem:[#allocation11] sm:$0xff] }
 0x445   :  { %2292 = vmatprep.subr.bf16.mxu0 %v2291_v52  ;;  %v2315_v5 = vpack.c.bf16 %v849_v63, %v848_v3  ;;  %v2345_v54 = vpack.c.bf16 %v1230_v51, %v1229_v49  ;;  %v1251_v3 = vld [vmem:[#allocation11 + $0xb0] sm:$0xff]  ;;  %v1252_v63 = vld [vmem:[#allocation11 + $0xb8] sm:$0xff] }
 0x447   :  { %2262 = vmatpush3.bf16.msra.mxu1 %v2261_v9  ;;  %v853_v9 = vld [vmem:[#allocation10 + $0xc8] sm:$0xff] }
 0x448   :  { %2264 = vmatprep.subr.bf16.mxu1 %v2263_v10  ;;  %2294 = vmatpush3.bf16.msra.mxu0 %v2291_v52  ;;  %v1247_v52 = vld [vmem:[#allocation11 + $0x90] sm:$0xff] }
 0x44b   :  { %2266 = vmatpush3.bf16.msra.mxu1 %v2265_v15  ;;  %v858_v15 = vld [vmem:[#allocation10 + $0xf0] sm:$0xff] }
 0x44c   :  { %2268 = vmatprep.subr.bf16.mxu1 %v2267_v17  ;;  %v859_v17 = vld [vmem:[#allocation10 + $0xf8] sm:$0xff] }
 0x44f   :  { %2270 = vmatpush3.bf16.msra.mxu1 %v2269_v21  ;;  %v2295_v21 = vpack.c.bf16 %v838_v19, %v837_v18  ;;  %v1257_v18 = vld [vmem:[#allocation11 + $0xe0] sm:$0xff]  ;;  %v1258_v19 = vld [vmem:[#allocation11 + $0xe8] sm:$0xff] }
 0x450   :  { %2272 = vmatprep.subr.bf16.mxu1 %v2271_v26  ;;  %v2299_v26 = vpack.c.bf16 %v840_v24, %v839_v22  ;;  %v2367_v22 = vpack.c.bf16 %v1258_v19, %v1257_v18  ;;  %v1242_v24 = vld [vmem:[#allocation11 + $0x68] sm:$0xff]  ;;  %v1507_v18 = vld [vmem:[#allocation14] sm:$0xff] }
 0x451   :  { %2296 = vmatprep.subr.bf16.mxu0 %v2295_v21  ;;  %v1508_v19 = vld [vmem:[#allocation14 + $0x8] sm:$0xff] }
 0x452   :  { %2298 = vmatpush3.bf16.msra.mxu0 %v2295_v21  ;;  %v1241_v21 = vld [vmem:[#allocation11 + $0x60] sm:$0xff] }
 0x453   :  { %2274 = vmatpush3.bf16.msra.mxu1 %v2273_v29  ;;  %2300 = vmatprep.subr.bf16.mxu0 %v2299_v26  ;;  %v2303_v29 = vpack.c.bf16 %v842_v28, %v841_v27  ;;  %v1260_v27 = vld [vmem:[#allocation11 + $0xf8] sm:$0xff]  ;;  %v2369_v28 = vpack.c.bf16 %v1242_v24, %v1241_v21  ;;  %v1509_v21 = vld [vmem:[#allocation14 + $0x10] sm:$0xff] }
 0x454   :  { %2308 = vmatprep.subr.bf16.mxu1 %v2307_v35  ;;  %v1510_v24 = vld [vmem:[#allocation14 + $0x18] sm:$0xff] }
 0x456   :  { %2302 = vmatpush3.bf16.msra.mxu0 %v2299_v26  ;;  %v1259_v26 = vld [vmem:[#allocation11 + $0xf0] sm:$0xff] }
 0x457   :  { %2304 = vmatprep.subr.bf16.mxu0 %v2303_v29 }
 0x45a   :  { %2306 = vmatpush3.bf16.msra.mxu0 %v2303_v29  ;;  %v2371_v29 = vpack.c.bf16 %v1260_v27, %v1259_v26  ;;  %v2406_v26 = vpack.c.bf16 %v1510_v24, %v1509_v21  ;;  %v1511_v27 = vld [vmem:[#allocation14 + $0x20] sm:$0xff] }
 0x509   :  { %v898_v53 = vpop.f32.mrb[12].mxu1 }
 0x50a   :  { %v900_v56 = vpop.f32.mrb[13].mxu1  ;;  %v907_v60 = vadd.f32 %v898_v53, %v629_v33  ;;  %v852_v33 = vld [vmem:[#allocation10 + $0xc0] sm:$0xff]  ;;  %v1248_v53 = vld [vmem:[#allocation11 + $0x98] sm:$0xff] }
 0x50b   :  { %v908_v57 = vadd.f32 %v2982_v37, %v900_v56  ;;  %v902_v59 = vpop.f32.mrb[14].mxu1  ;;  %v2323_v10 = vpack.c.bf16 %v853_v9, %v852_v33  ;;  %v2347_v55 = vpack.c.bf16 %v1248_v53, %v1247_v52  ;;  %v1231_v56 = vld [vmem:[#allocation11 + $0x10] sm:$0xff]  ;;  %v1253_v33 = vld [vmem:[#allocation11 + $0xc0] sm:$0xff]  ;;  %v1254_v9 = vld [vmem:[#allocation11 + $0xc8] sm:$0xff] }
 0x50c   :  { %v904_v61 = vpop.f32.mrb[15].mxu1  ;;  %v909_v4 = vadd.f32 %v902_v59, %v630_v32  ;;  %v856_v32 = vld [vmem:[#allocation10 + $0xe0] sm:$0xff]  ;;  %v1654_v52 = vld [vmem:[%s3078_s14 + $0x2] ss:$0 sm:$0xff] }
 0x50d   :  { %v910_v0 = vadd.f32 %v2980_v36, %v904_v61  ;;  %979 = vmatprep.mubr.f32.mxu1 %v908_v57  ;;  %v2331_v14 = vpack.c.bf16 %v857_v13, %v856_v32  ;;  %v1232_v57 = vld [vmem:[#allocation11 + $0x18] sm:$0xff]  ;;  %v1249_v59 = vld [vmem:[#allocation11 + $0xa0] sm:$0xff]  ;;  %v1255_v32 = vld [vmem:[#allocation11 + $0xd0] sm:$0xff] }
 0x50e   :  { %980 = vmatmul.mubr.f32.vlgmr.msra.gmra.mrb[16].mxu1 %v907_v60  ;;  %v1250_v60 = vld [vmem:[#allocation11 + $0xa8] sm:$0xff]  ;;  %v2349_v61 = vpack.c.bf16 %v1232_v57, %v1231_v56  ;;  %v1256_v13 = vld [vmem:[#allocation11 + $0xd8] sm:$0xff]  ;;  %v1415_v57 = vld [vmem:[#allocation13] sm:$0xff] }
 0x50f   :  { %2310 = vmatpush3.bf16.msra.mxu1 %v2307_v35  ;;  %984 = vmatprep.mubr.f32.mxu1 %v910_v0  ;;  %v1233_v0 = vld [vmem:[#allocation11 + $0x20] sm:$0xff] }
 0x510   :  { %2312 = vmatprep.subr.bf16.mxu1 %v2311_v62 }
 0x512   :  { %985 = vmatmul.mubr.f32.gmra.mrb[18].mxu1 %v909_v4 }
 0x513   :  { %2314 = vmatpush3.bf16.msra.mxu1 %v2311_v62  ;;  %2052 = vmatprep.mubr.f32.mxu1 %v2982_v37  ;;  %v2335_v37 = vpack.c.bf16 %v859_v17, %v858_v15  ;;  %v2351_v62 = vpack.c.bf16 %v1250_v60, %v1249_v59  ;;  %v1239_v15 = vld [vmem:[#allocation11 + $0x50] sm:$0xff]  ;;  %v1240_v17 = vld [vmem:[#allocation11 + $0x58] sm:$0xff]  ;;  %v1416_v59 = vld [vmem:[#allocation13 + $0x8] sm:$0xff] }
 0x514   :  { %2316 = vmatprep.subr.bf16.mxu1 %v2315_v5 }
 0x517   :  { %2318 = vmatpush3.bf16.msra.mxu1 %v2315_v5  ;;  %v2355_v5 = vpack.c.bf16 %v1252_v63, %v1251_v3  ;;  %v1419_v63 = vld [vmem:[#allocation13 + $0x20] sm:$0xff] }
 0x518   :  { %2320 = vmatprep.subr.bf16.mxu1 %v2319_v8 }
 0x51b   :  { %2322 = vmatpush3.bf16.msra.mxu1 %v2319_v8  ;;  %v2357_v8 = vpack.c.bf16 %v1236_v7, %v1235_v6  ;;  %v1421_v6 = vld [vmem:[#allocation13 + $0x30] sm:$0xff]  ;;  %v1422_v7 = vld [vmem:[#allocation13 + $0x38] sm:$0xff] }
 0x51c   :  { %2324 = vmatprep.subr.bf16.mxu1 %v2323_v10 }
 0x51f   :  { %2326 = vmatpush3.bf16.msra.mxu1 %v2323_v10  ;;  %v2359_v10 = vpack.c.bf16 %v1254_v9, %v1253_v33  ;;  %v1423_v33 = vld [vmem:[#allocation13 + $0x40] sm:$0xff]  ;;  %v1424_v9 = vld [vmem:[#allocation13 + $0x48] sm:$0xff] }
 0x520   :  { %2328 = vmatprep.subr.bf16.mxu1 %v2327_v31 }
 0x523   :  { %2330 = vmatpush3.bf16.msra.mxu1 %v2327_v31  ;;  %v2361_v31 = vpack.c.bf16 %v1238_v12, %v1237_v11  ;;  %v1425_v11 = vld [vmem:[#allocation13 + $0x50] sm:$0xff]  ;;  %v1426_v12 = vld [vmem:[#allocation13 + $0x58] sm:$0xff] }
 0x524   :  { %2332 = vmatprep.subr.bf16.mxu1 %v2331_v14 }
 0x527   :  { %2334 = vmatpush3.bf16.msra.mxu1 %v2331_v14  ;;  %v2363_v14 = vpack.c.bf16 %v1256_v13, %v1255_v32  ;;  %v1427_v32 = vld [vmem:[#allocation13 + $0x60] sm:$0xff]  ;;  %v1428_v13 = vld [vmem:[#allocation13 + $0x68] sm:$0xff] }
 0x528   :  { %2336 = vmatprep.subr.bf16.mxu1 %v2335_v37 }
 0x52b   :  { %2338 = vmatpush3.bf16.msra.mxu1 %v2335_v37  ;;  %v2365_v37 = vpack.c.bf16 %v1240_v17, %v1239_v15  ;;  %v1429_v15 = vld [vmem:[#allocation13 + $0x70] sm:$0xff]  ;;  %v1430_v17 = vld [vmem:[#allocation13 + $0x78] sm:$0xff] }
 0x52e   :  { %2053 = vmatmul.mubr.f32.vlgmr.msra.gmra.mrb[20].mxu1 %v2980_v36  ;;  %v3005_v36 = vld [vmem:[%s3074_s10 + $0x4] sm:$0x7] }
 0x52f   :  { %2059 = vmatprep.mubr.msk.f32.mxu1 %vm175_vm0, %v2956_v16  ;;  %v914_v30 = vrot.slane %v3005_v36, %v471_v58  ;;  %v1245_v58 = vld [vmem:[#allocation11 + $0x80] sm:$0xff] }
 0x530   :  { %v2343_v50 = vpack.c.bf16 %v1246_v48, %v1245_v58 }
 0x532   :  { %2344 = vmatprep.subr.bf16.mxu0 %v2343_v50 }
 0x5e1   :  { %v1775_v16 = vpop.f32.mrb[16].mxu1 }
 0x5e2   :  { %v1776_v34 = vpop.f32.mrb[17].mxu1 }
 0x5e3   :  { %v1777_v35 = vadd.f32 %v1776_v34, %v1775_v16  ;;  %v1243_v16 = vld [vmem:[#allocation11 + $0x70] sm:$0xff] }
 0x5e5   :  { %v982_v38 = vadd.f32 %v1777_v35, %v914_v30  ;;  %v1778_v39 = vpop.f32.mrb[18].mxu1 }
 0x5e6   :  { %v1779_v40 = vpop.f32.mrb[19].mxu1 }
 0x5e7   :  { %v990_v41 = vmax.f32 %v982_v38, 0.0  ;;  %v1780_v42 = vadd.f32 %v1779_v40, %v1778_v39  ;;  %v1151_v39 = vrot.slane %v3005_v36, %v708_v23  ;;  %v2679_v23 = vmov 0.0|0.0  }
 0x5e9   :  { %v987_v43 = vadd.f32 %v1780_v42, %v914_v30  ;;  %2017 = vmatprep.mubr.f32.mxu0 %v990_v41  ;;  %v1244_v30 = vld [vmem:[#allocation11 + $0x78] sm:$0xff] }
 0x5ea   :  { %v2373_v34 = vpack.c.bf16 %v1244_v30, %v1243_v16  ;;  %v1513_v16 = vld [vmem:[#allocation14 + $0x30] sm:$0xff]  ;;  %v1514_v30 = vld [vmem:[#allocation14 + $0x38] sm:$0xff] }
 0x5eb   :  { %v991_v44 = vmax.f32 %v987_v43, 0.0 }
 0x5ed   :  { %2018 = vmatmul.mubr.f32.vlgmr.msra.gmra.mrb[6].mxu0 %v991_v44  ;;  %v995_v44 = vrot.slane %v3005_v36, %v552_v25 }
 0x5ee   :  { %2346 = vmatpush3.bf16.msra.mxu0 %v2345_v54 }
 0x5ef   :  { %2348 = vmatprep.subr.bf16.mxu0 %v2347_v55 }
 0x5f2   :  { %2350 = vmatpush3.bf16.msra.mxu0 %v2349_v61  ;;  %v1341_v61 = vld [vmem:[#allocation5] sm:$0x3] }
 0x5f3   :  { %2352 = vmatprep.subr.bf16.mxu0 %v2351_v62  ;;  %v2379_v62 = vpack.c.bf16 %v1416_v59, %v1415_v57 }
 0x601   :  { %v2054_v45 = vpop.f32.mrb[20].mxu1 }
 0x602   :  { %v1139_v46 = vpop.f32.mrb[21].mxu1 }
 0x603   :  { %v2339_v47 = vpack.c.bf16 %v2054_v45, %v1139_v46 }
 0x605   :  { %2340 = vmatprep.subr.bf16.mxu1 %v2339_v47 }
 0x606   :  { %2342 = vmatpush3.bf16.msra.mxu1 %v2339_v47 }
 0x607   :  { %2375 = vmatprep.subr.bf16.mxu1 %v2679_v23 }
 0x609   :  { %2060 = vmatmul.mubr.msk.f32.vlgmr.msra.gmra.mrb[22].mxu1 %vm175_vm0, %v2963_v20  ;;  %v1234_v20 = vld [vmem:[#allocation11 + $0x28] sm:$0xff] }
 0x60a   :  { %v2353_v4 = vpack.c.bf16 %v1234_v20, %v1233_v0  ;;  %2066 = vmatprep.mubr.msk.f32.mxu1 %vm2680_vm2, %v2681_v2  ;;  %v1417_v0 = vld [vmem:[#allocation13 + $0x10] sm:$0xff]  ;;  %v1418_v20 = vld [vmem:[#allocation13 + $0x18] sm:$0xff] }
 0x60b   :  { %v2382_v3 = vpack.c.bf16 %v1418_v20, %v1417_v0 }
 0x60c   :  { %2354 = vmatpush3.bf16.msra.mxu0 %v2353_v4  ;;  %v1420_v4 = vld [vmem:[#allocation13 + $0x28] sm:$0xff] }
 0x60d   :  { %2356 = vmatprep.subr.bf16.mxu0 %v2355_v5  ;;  %v2385_v5 = vpack.c.bf16 %v1420_v4, %v1419_v63 }
 0x610   :  { %2358 = vmatpush3.bf16.msra.mxu0 %v2357_v8  ;;  %v2388_v8 = vpack.c.bf16 %v1422_v7, %v1421_v6 }
 0x611   :  { %2360 = vmatprep.subr.bf16.mxu0 %v2359_v10  ;;  %v2391_v10 = vpack.c.bf16 %v1424_v9, %v1423_v33 }
 0x614   :  { %2362 = vmatpush3.bf16.msra.mxu0 %v2361_v31  ;;  %v2394_v31 = vpack.c.bf16 %v1426_v12, %v1425_v11 }
 0x615   :  { %2364 = vmatprep.subr.bf16.mxu0 %v2363_v14  ;;  %v2397_v14 = vpack.c.bf16 %v1428_v13, %v1427_v32 }
 0x618   :  { %2366 = vmatpush3.bf16.msra.mxu0 %v2365_v37  ;;  %v2400_v37 = vpack.c.bf16 %v1430_v17, %v1429_v15 }
 0x619   :  { %2368 = vmatprep.subr.bf16.mxu0 %v2367_v22  ;;  %v2403_v22 = vpack.c.bf16 %v1508_v19, %v1507_v18 }
 0x61c   :  { %2370 = vmatpush3.bf16.msra.mxu0 %v2369_v28  ;;  %v1512_v28 = vld [vmem:[#allocation14 + $0x28] sm:$0xff] }
 0x61d   :  { %2372 = vmatprep.subr.bf16.mxu0 %v2371_v29  ;;  %v2409_v29 = vpack.c.bf16 %v1512_v28, %v1511_v27 }
 0x620   :  { %2374 = vmatpush3.bf16.msra.mxu0 %v2373_v34  ;;  %v2412_v34 = vpack.c.bf16 %v1514_v30, %v1513_v16 }
 0x621   :  { %2402 = vmatprep.subr.bf16.mxu0 %v2679_v23 }
 0x6c0   :  { %v2019_v35 = vpop.f32.mrb[6].mxu0 }
 0x6c1   :  { %v1062_v38 = vpop.f32.mrb[7].mxu0  ;;  %v1068_v47 = vadd.f32 %v2019_v35, %v995_v44  ;;  %v1515_v35 = vld [vmem:[#allocation14 + $0x40] sm:$0xff] }
 0x6c2   :  { %v1063_v45 = vadd.f32 %v1062_v38, %v995_v44  ;;  %v1516_v38 = vld [vmem:[#allocation14 + $0x48] sm:$0xff] }
 0x6c3   :  { %v1072_v49 = vmax.f32 %v1068_v47, 0.0  ;;  %v1520_v44 = vld [vmem:[#allocation14 + $0x68] sm:$0xff] }
 0x6c4   :  { %v1071_v58 = vmax.f32 %v1063_v45, 0.0 }
 0x6dc   :  { %v2061_v40 = vpop.f32.mrb[22].mxu1 }
 0x6dd   :  { %v1218_v41 = vpop.f32.mrb[23].mxu1  ;;  %v1224_v42 = vadd.f32 %v2061_v40, %v1151_v39  ;;  %v1517_v40 = vld [vmem:[#allocation14 + $0x50] sm:$0xff] }
 0x6de   :  { %v1219_v43 = vadd.f32 %v1218_v41, %v1151_v39  ;;  %v2415_v39 = vpack.c.bf16 %v1516_v38, %v1515_v35  ;;  %v1518_v41 = vld [vmem:[#allocation14 + $0x58] sm:$0xff] }
 0x6e0   :  { %2448 = vtanh.f32 %v1219_v43  ;;  %v1519_v43 = vld [vmem:[#allocation14 + $0x60] sm:$0xff] }
 0x6e1   :  { %2450 = vtanh.f32 %v1224_v42  ;;  %v2418_v42 = vpack.c.bf16 %v1518_v41, %v1517_v40  ;;  %v2421_v45 = vpack.c.bf16 %v1520_v44, %v1519_v43 }
 0x6ea   :  { %v2449_v46 = vpop.eup %2448 }
 0x6eb   :  { %1330 = vmatprep.mubr.f32.mxu0 %v2449_v46  ;;  %v2451_v48 = vpop.eup %2450 }
 0x6ec   :  { %1331 = vmatmul.mubr.f32.vlgmr.msra.gmra.mrb[8].mxu0 %v1071_v58  ;;  %v1521_v58 = vld [vmem:[#allocation14 + $0x70] sm:$0xff] }
 0x6ed   :  { %1335 = vmatprep.mubr.f32.mxu0 %v2451_v48  ;;  %2404 = vmatpush3.bf16.msra.mxu0 %v2403_v22  ;;  %v1522_v48 = vld [vmem:[#allocation14 + $0x78] sm:$0xff] }
 0x6ee   :  { %2405 = vmatprep.subr.bf16.mxu0 %v2679_v23 }
 0x6f0   :  { %1336 = vmatmul.mubr.f32.gmra.mrb[10].mxu0 %v1072_v49  ;;  %v2424_v49 = vpack.c.bf16 %v1522_v48, %v1521_v58 }
 0x6f1   :  { %2136 = vmatprep.mubr.msk.f32.mxu0 %vm2680_vm2, %v2681_v2  ;;  %2407 = vmatpush3.bf16.msra.mxu0 %v2406_v26 }
 0x6f2   :  { %2408 = vmatprep.subr.bf16.mxu0 %v2679_v23 }
 0x6f5   :  { %2410 = vmatpush3.bf16.msra.mxu0 %v2409_v29 }
 0x6f6   :  { %2411 = vmatprep.subr.bf16.mxu0 %v2679_v23 }
 0x6f9   :  { %2413 = vmatpush3.bf16.msra.mxu0 %v2412_v34 }
 0x6fa   :  { %2414 = vmatprep.subr.bf16.mxu0 %v2679_v23 }
 0x6fd   :  { %2416 = vmatpush3.bf16.msra.mxu0 %v2415_v39 }
 0x6fe   :  { %2417 = vmatprep.subr.bf16.mxu0 %v2679_v23 }
 0x701   :  { %2419 = vmatpush3.bf16.msra.mxu0 %v2418_v42 }
 0x702   :  { %2420 = vmatprep.subr.bf16.mxu0 %v2679_v23 }
 0x705   :  { %2422 = vmatpush3.bf16.msra.mxu0 %v2421_v45 }
 0x706   :  { %2423 = vmatprep.subr.bf16.mxu0 %v2679_v23 }
 0x709   :  { %2425 = vmatpush3.bf16.msra.mxu0 %v2424_v49 }
 0x7bf   :  { %v1853_v25 = vpop.f32.mrb[8].mxu0 }
 0x7c0   :  { %v1854_v36 = vpop.f32.mrb[9].mxu0 }
 0x7c1   :  { %v1855_v50 = vadd.f32 %v1854_v36, %v1853_v25 }
 0x7c3   :  { %v1856_v51 = vpop.f32.mrb[10].mxu0  ;;  %v1333_v55 = vadd.f32 %v1855_v50, %v1654_v52 }
 0x7c4   :  { %v1857_v53 = vpop.f32.mrb[11].mxu0 }
 0x7c5   :  { %v1858_v54 = vadd.f32 %v1857_v53, %v1856_v51 }
 0x7c7   :  { %v1338_v56 = vadd.f32 %v1858_v54, %v1654_v52  ;;  %v1601_v52 = vand.u32 127, %v469_v1 }
 0x7c9   :  { %v2376_v60 = vpack.c.bf16 %v1338_v56, %v1333_v55  ;;  %vm1602_vm3 = vcmp.lt.s32.totalorder %v1601_v52, 4 }
 0x7cb   :  { %2377 = vmatpush3.bf16.msra.mxu1 %v2376_v60 }
 0x7cc   :  { %2378 = vmatprep.subr.bf16.mxu1 %v2679_v23 }
 0x7ce   :  { %2067 = vmatmul.mubr.msk.f32.vlgmr.msra.gmra.mrb[24].mxu1 %vm175_vm0, %v1341_v61 }
 0x7cf   :  { %2380 = vmatpush3.bf16.msra.mxu1 %v2379_v62  ;;  %2101 = vmatprep.mubr.msk.f32.mxu1 %vm2680_vm2, %v2681_v2  ;;  %v1656_v2 = vld [vmem:[%s3078_s14 + $0x3] ss:$0 sm:$0xff]  ;;  %s2682_s14 = smov [#allocation16]  }
 0x7d0   :  { %2381 = vmatprep.subr.bf16.mxu1 %v2679_v23 }
 0x7d3   :  { %2383 = vmatpush3.bf16.msra.mxu1 %v2382_v3 }
 0x7d4   :  { %2384 = vmatprep.subr.bf16.mxu1 %v2679_v23 }
 0x7d7   :  { %2386 = vmatpush3.bf16.msra.mxu1 %v2385_v5 }
 0x7d8   :  { %2387 = vmatprep.subr.bf16.mxu1 %v2679_v23 }
 0x7db   :  { %2389 = vmatpush3.bf16.msra.mxu1 %v2388_v8 }
 0x7dc   :  { %2390 = vmatprep.subr.bf16.mxu1 %v2679_v23 }
 0x7df   :  { %2392 = vmatpush3.bf16.msra.mxu1 %v2391_v10 }
 0x7e0   :  { %2393 = vmatprep.subr.bf16.mxu1 %v2679_v23 }
 0x7e3   :  { %2395 = vmatpush3.bf16.msra.mxu1 %v2394_v31 }
 0x7e4   :  { %2396 = vmatprep.subr.bf16.mxu1 %v2679_v23 }
 0x7e7   :  { %2398 = vmatpush3.bf16.msra.mxu1 %v2397_v14 }
 0x7e8   :  { %2399 = vmatprep.subr.bf16.mxu1 %v2679_v23  ;;  %v1657_v23 = vld [vmem:[%s3079_s15] ss:$0 sm:$0xff]  ;;  %s1627_s15 = sshll.u32 %s2682_s14, 4  ;;  %s1628_s15 = int_to_ptr.vmem [resolvable:$true] %s1627_s15 }
 0x7e9   :  { %s2632_s22 = scalar_lea.vmem %s1628_s15, 32  ;;  %p2637_p9 = scmp.lt.s32.totalorder %s1628_s15, %s1628_s15 }
 0x7ea   :  { %p2633_p8 = scmp.ne.s32.totalorder %s1628_s15, %s2632_s22  ;;  %p2638_p10 = scmp.lt.s32.totalorder %s2632_s22, %s2632_s22 }
 0x7eb   :  { %2401 = vmatpush3.bf16.msra.mxu1 %v2400_v37 }
 0x7ec   :  { %p2639_p11 = por %p2638_p10, %p2637_p9 }
 0x7ee   :  { %p2640_p12 = pnand %p2639_p11, %p2633_p8 }
 0x8a1   :  { %v1411_v46 = vpop.f32.mrb[24].mxu1 }
 0x8a2   :  { %v2068_v47 = vpop.f32.mrb[25].mxu1  ;;  %2102 = vmatmul.mubr.f32.vlgmr.msra.gmra.mrb[26].mxu1 %v1411_v46 }
 0x975   :  { %v1502_v25 = vpop.f32.mrb[26].mxu1 }
 0x976   :  { %v1503_v36 = vadd.f32 %v1656_v2, %v1502_v25  ;;  %v2103_v50 = vpop.f32.mrb[27].mxu1 }
 0x978   :  { %v1506_v51 = vmax.f32 %v1503_v36, 0.0 }
 0x97a   :  { %2137 = vmatmul.mubr.f32.vlgmr.msra.gmra.mrb[12].mxu0 %v1506_v51 }
 0xa4d   :  { %v1596_v53 = vpop.f32.mrb[12].mxu0 }
 0xa4e   :  { %v1597_v54 = vadd.f32 %v1657_v23, %v1596_v53  ;;  %v2138_v55 = vpop.f32.mrb[13].mxu0 }
 0xa50   :  { %v1603_v56 = vsel %vm1602_vm3, %v1597_v54, -1e+30 }
 0xa51   :  { %v1605_v57 = vsel %vm1604_vm4, %v1603_v56, -inf }
 0xa52   :  { %1606 = vmax.xlane.f32.xlu0 %v1605_v57 }
 0xadf   :  { %v1607_v59 = vpop.xlane.xlu0 %1606 }
 0xae0   :  { %v1608_v60 = vsub.f32 %v1603_v56, %v1607_v59 }
 0xae2   :  { %v1609_v61 = vmul.f32 1.442695, %v1608_v60 }
 0xae4   :  { %2452 = vpow2.f32 %v1609_v61 }
 0xaee   :  { %v2453_v62 = vpop.eup %2452 }
 0xaef   :  { %v1611_v1 = vsel %vm1602_vm3, %v2453_v62, 0.0 }
 0xaf0   :  { %v1612_v0 = vsel %vm1604_vm4, %v1611_v1, 0.0 }
 0xaf1   :  { %1613 = vadd.xlane.f32.xlu0 %v1612_v0 }
 0xb7e   :  { %v1614_v20 = vpop.xlane.xlu0 %1613 }
 0xb7f   :  { %2454 = vlog2.f32 %v1614_v20 }
 0xb89   :  { %v2455_v3 = vpop.eup %2454 }
 0xb8a   :  { %v1616_v63 = vmul.f32 0.6931472, %v2455_v3 }
 0xb8c   :  { %v1617_v4 = vadd.f32 %v1616_v63, %v1607_v59 }
 0xb8e   :  { %v1618_v5 = vsub.f32 %v1597_v54, %v1617_v4 }
 0xb90   :  { %v1619_v6 = vsel %vm1602_vm3, %v1618_v5, 0.0 }
 0xb91   :  { %1620 = vst [vmem:[#allocation16] sm:$0x3] %v1619_v6 }
 0xb92   :  { %2643 = shalt.err (!%p2640_p12)
}
 0xb93   :  { %s2644_s28 = scalar_lea.hbm %s3080_s16, 32 }
 0xb94   :  { %p2645_p13 = scmp.ne.s32.totalorder %s3080_s16, %s2644_s28  ;;  %p2648_p0 = scmp.lt.u32.totalorder %s2644_s28, %s3080_s16 }
 0xb96   :  { %p2650_p1 = pnand %p2648_p0, %p2645_p13 }
 0xb98   :  { %2653 = shalt.err (!%p2650_p1)
}
 0xb99   :  { %1630 = dma.vmem_to_hbm [thread:$0]  %s1628_s15, 32, %s3080_s16, [#allocation4]  }
 0xb9a   :  { %2664 = dma.done.wait [#allocation4], 32  }
 0xb9b   :  { %2665 = vsyncadd [#allocation4], 4294967264 }
 0xb9c   :  { %1634 = vsyncpa [#allocation3], 1 }
 0xb9d   :  { %1635 = vsyncpa [#allocation6], 1 }
 0xb9e   :  { %1636 = vsyncpa [#allocation9], 1 }
 0xb9f   :  { %1637 = vsyncpa [#allocation12], 1 }
 0xba0   :  { %1638 = vsyncpa [#allocation15], 1 }
 0xba1   :  { %1639 = vsyncpa [#allocation4], 1 }

</bundles_post_ra>
